<compile_context>
chip_gen: v7x
topology: tpu7x:2x2x1
jax: 0.10.0
libtpu: 0.0.40
codegen_flags: <defaults>
</compile_context>

<pallas_src>
import functools

import jax
import jax.numpy as jnp
from jax.experimental import pallas as pl
from jax.experimental.pallas import tpu as pltpu


# ----------------------------------------------------------------------------
# Fused conv stage kernel: 5x5 conv (as 5 row-shifted banded matmuls) + bias
# + SiLU + 2x2 max-pool, one image per grid step.
# ----------------------------------------------------------------------------
def _conv_stage_kernel(x_ref, m_ref, b_ref, o_ref, *, H, WoC):
    # x_ref: (1, H+4, (W+4)*Cin) f32  - one zero-padded image, cols = (w_pad, cin)
    # m_ref: (5, (W+4)*Cin, 2*WoC) bf16 - banded weights per dh tap, cols = (w&1, w//2, cout)
    # b_ref: (1, 2*WoC) f32
    # o_ref: (1, H//2, WoC) f32 - SiLU'd + pooled activation, lane-dense (WoC = 128)
    N = 2 * WoC
    acc = jnp.zeros((H, N), jnp.float32)
    for dh in range(5):                                   # unrolled row taps
        xs = x_ref[0, dh:dh + H, :].astype(jnp.bfloat16)  # (H, (W+4)*Cin)
        acc = acc + jnp.dot(xs, m_ref[dh], preferred_element_type=jnp.float32)
    y = acc + b_ref[...]                                  # bias in f32
    y = y * jax.nn.sigmoid(y)                             # SiLU in f32
    y = jnp.max(y.reshape(H // 2, 2, N), axis=1)          # pool over h pairs
    y = jnp.maximum(y[:, :WoC], y[:, WoC:])               # pool over w pairs (aligned halves)
    o_ref[0] = y.astype(o_ref.dtype)


def conv_stage(xp2d, m, b, *, H, WoC):
    """xp2d: (B, H+4, (W+4)*Cin) f32; m: (5, (W+4)*Cin, 2*WoC) bf16; b: (1, 2*WoC)."""
    B, Hpad, Kin = xp2d.shape
    Ho = H // 2
    kernel = functools.partial(_conv_stage_kernel, H=H, WoC=WoC)
    return pl.pallas_call(
        kernel,
        out_shape=jax.ShapeDtypeStruct((B, Ho, WoC), jnp.float32),
        grid=(B,),
        in_specs=[
            pl.BlockSpec((1, Hpad, Kin), lambda i: (i, 0, 0)),
            pl.BlockSpec((5, Kin, 2 * WoC), lambda i: (0, 0, 0)),
            pl.BlockSpec((1, 2 * WoC), lambda i: (0, 0)),
        ],
        out_specs=pl.BlockSpec((1, Ho, WoC), lambda i: (i, 0, 0)),
        compiler_params=pltpu.CompilerParams(
            dimension_semantics=("parallel",)),
    )(xp2d, m, b)


# ----------------------------------------------------------------------------
# Fused FC stack: fc1+SiLU -> fc2+SiLU -> fc3, single kernel, 128-lane padded.
# ----------------------------------------------------------------------------
def _fc_kernel(x_ref, w1_ref, b1_ref, w2_ref, b2_ref, w3_ref, b3_ref, o_ref):
    x = x_ref[...].astype(jnp.bfloat16)                                    # (B, 1024)
    h = jnp.dot(x, w1_ref[...], preferred_element_type=jnp.float32) + b1_ref[...]
    h = h * jax.nn.sigmoid(h)                                              # (B, 128)
    h = jnp.dot(h.astype(jnp.bfloat16), w2_ref[...],
                preferred_element_type=jnp.float32) + b2_ref[...]
    h = h * jax.nn.sigmoid(h)                                              # (B, 128)
    h = jnp.dot(h.astype(jnp.bfloat16), w3_ref[...],
                preferred_element_type=jnp.float32) + b3_ref[...]
    o_ref[...] = h.astype(o_ref.dtype)                                     # (B, 128)


def fc_fused(x, w1, b1, w2, b2, w3, b3):
    B, K = x.shape
    return pl.pallas_call(
        _fc_kernel,
        out_shape=jax.ShapeDtypeStruct((B, 128), jnp.float32),
        in_specs=[
            pl.BlockSpec((B, K), lambda: (0, 0)),
            pl.BlockSpec((K, 128), lambda: (0, 0)),
            pl.BlockSpec((1, 128), lambda: (0, 0)),
            pl.BlockSpec((128, 128), lambda: (0, 0)),
            pl.BlockSpec((1, 128), lambda: (0, 0)),
            pl.BlockSpec((128, 128), lambda: (0, 0)),
            pl.BlockSpec((1, 128), lambda: (0, 0)),
        ],
        out_specs=pl.BlockSpec((B, 128), lambda: (0, 0)),
    )(x, w1, b1, w2, b2, w3, b3)


# ----------------------------------------------------------------------------
# One-time weight preprocessing (banded conv matrices, permuted/padded FC).
# ----------------------------------------------------------------------------
def _make_banded(w_conv, *, W):
    """w_conv: (Cout, Cin, 5, 5). Returns (5, (W+4)*Cin, W*Cout) bf16 with
    M[dh, (w+dw)*Cin + c, col'(w, co)] = w_conv[co, c, dh, dw],
    where col' = (w % 2) * (W//2 * Cout) + (w // 2) * Cout + co."""
    Cout, Cin, KH, KW = w_conv.shape
    Wo = W // 2
    k = jnp.transpose(w_conv, (2, 3, 1, 0))                  # (5, 5, Cin, Cout)
    eye_w = jnp.eye(W, dtype=w_conv.dtype)
    mats = []
    for dh in range(KH):
        m = jnp.zeros(((W + KW - 1) * Cin, W * Cout), w_conv.dtype)
        for dw in range(KW):
            blk = jnp.kron(eye_w, k[dh, dw])                 # (W*Cin, W*Cout)
            m = m + jnp.pad(blk, ((dw * Cin, (KW - 1 - dw) * Cin), (0, 0)))
        # columns: (w, co) = (2*wo + s, co)  ->  (s, wo, co)
        m = m.reshape((W + KW - 1) * Cin, Wo, 2, Cout)
        m = jnp.transpose(m, (0, 2, 1, 3)).reshape((W + KW - 1) * Cin, W * Cout)
        mats.append(m)
    return jnp.stack(mats, axis=0).astype(jnp.bfloat16)


def _expand_bias(b, *, W):
    # bias broadcast over the (s, wo, co) column order -> (1, W*Cout) f32
    return jnp.tile(b, W).reshape(1, -1).astype(jnp.float32)


def prepare_params(p):
    prep = {
        "m1": _make_banded(p["conv1_w"], W=32),   # (5, 108, 256) bf16
        "be1": _expand_bias(p["conv1_b"], W=32),  # (1, 256) f32
        "m2": _make_banded(p["conv2_w"], W=16),   # (5, 160, 256) bf16
        "be2": _expand_bias(p["conv2_b"], W=16),  # (1, 256) f32
    }
    # fc1: PyTorch flatten order (c, h, w) -> conv2 activation order (h, w, c),
    # then pad 120 -> 128 output lanes.
    w1 = p["fc1_w"].T.reshape(16, 8, 8, 120)                  # [c, h, w, out]
    w1 = jnp.transpose(w1, (1, 2, 0, 3)).reshape(1024, 120)   # rows = h*128 + w*16 + c
    prep["w1"] = jnp.pad(w1, ((0, 0), (0, 8))).astype(jnp.bfloat16)
    prep["b1"] = jnp.pad(p["fc1_b"], (0, 8)).reshape(1, 128).astype(jnp.float32)
    prep["w2"] = jnp.pad(p["fc2_w"].T, ((0, 8), (0, 72))).astype(jnp.bfloat16)
    prep["b2"] = jnp.pad(p["fc2_b"], (0, 72)).reshape(1, 128).astype(jnp.float32)
    prep["w3"] = jnp.pad(p["fc3_w"].T, ((0, 72), (0, 118))).astype(jnp.bfloat16)
    prep["b3"] = jnp.pad(p["fc3_b"], (0, 118)).reshape(1, 128).astype(jnp.float32)
    return prep


# ----------------------------------------------------------------------------
# Full forward pass
# ----------------------------------------------------------------------------
def net_forward(x_nchw, prep):
    B = x_nchw.shape[0]
    # conv1 input: NCHW -> NHWC, zero-pad 2, flatten (w, c) into the lane dim
    x = jnp.transpose(x_nchw, (0, 2, 3, 1))                          # (B, 32, 32, 3)
    x = jnp.pad(x, ((0, 0), (2, 2), (2, 2), (0, 0))).reshape(B, 36, 36 * 3)
    z1 = conv_stage(x, prep["m1"], prep["be1"], H=32, WoC=128)       # (B, 16, 128)
    # conv2 input: (B, 16, 16, 8) feature map, zero-pad 2 (free reshapes)
    z1 = z1.reshape(B, 16, 16, 8)
    z1 = jnp.pad(z1, ((0, 0), (2, 2), (2, 2), (0, 0))).reshape(B, 20, 20 * 8)
    z2 = conv_stage(z1, prep["m2"], prep["be2"], H=16, WoC=128)      # (B, 8, 128)
    feat = z2.reshape(B, 1024)                                       # contiguous collapse
    out = fc_fused(feat, prep["w1"], prep["b1"], prep["w2"], prep["b2"],
                   prep["w3"], prep["b3"])                           # (B, 128)
    return out[:, :10]


def init_params(key):
    ks = jax.random.split(key, 10)
    s = 0.05
    return {
        "conv1_w": s * jax.random.normal(ks[0], (8, 3, 5, 5), jnp.float32),
        "conv1_b": s * jax.random.normal(ks[1], (8,), jnp.float32),
        "conv2_w": s * jax.random.normal(ks[2], (16, 8, 5, 5), jnp.float32),
        "conv2_b": s * jax.random.normal(ks[3], (16,), jnp.float32),
        # PyTorch Linear layout: (out_features, in_features)
        "fc1_w": s * jax.random.normal(ks[4], (120, 16 * 8 * 8), jnp.float32),
        "fc1_b": s * jax.random.normal(ks[5], (120,), jnp.float32),
        "fc2_w": s * jax.random.normal(ks[6], (56, 120), jnp.float32),
        "fc2_b": s * jax.random.normal(ks[7], (56,), jnp.float32),
        "fc3_w": s * jax.random.normal(ks[8], (10, 56), jnp.float32),
        "fc3_b": s * jax.random.normal(ks[9], (10,), jnp.float32),
    }


if __name__ == "__main__":
    key = jax.random.PRNGKey(0)
    k_x, k_p = jax.random.split(key)
    # fc1 expects 16*8*8 features, which forces 32x32 spatial input; batch=2
    x = jax.random.normal(k_x, (2, 3, 32, 32), jnp.float32)
    params = init_params(k_p)
    prep = prepare_params(params)      # one-time weight preprocessing

    fwd = jax.jit(net_forward)
    out = fwd(x, prep)
    out = jax.block_until_ready(out)

    assert out.shape == (2, 10), out.shape
    assert bool(jnp.all(jnp.isfinite(out)))
    print("KERNEL_OK")
</pallas_src>

<mosaic_0001>
module attributes {stable_mosaic.version = 11 : i64} {
  func.func @_conv_stage_kernel(%arg0: i32, %arg1: memref<1x36x108xf32, #tpu.memory_space<vmem>>, %arg2: memref<5x108x256xbf16, #tpu.memory_space<vmem>>, %arg3: memref<1x256xf32, #tpu.memory_space<vmem>>, %arg4: memref<1x16x128xf32, #tpu.memory_space<vmem>>) attributes {dimension_semantics = [#tpu.dimension_semantics<parallel>], iteration_bounds = array<i64: 2>, scalar_prefetch = 0 : i64, scratch_operands = 0 : i64, tpu.core_type = #tpu.core_type<tc>, window_params = [{transform_indices = @transform_0, window_bounds = array<i64: 1, 36, 108>}, {pipeline_mode = #tpu.pipeline_mode<synchronous>, transform_indices = @transform_1, window_bounds = array<i64: 5, 108, 256>}, {pipeline_mode = #tpu.pipeline_mode<synchronous>, transform_indices = @transform_2, window_bounds = array<i64: 1, 256>}, {transform_indices = @transform_3, window_bounds = array<i64: 1, 16, 128>}]} {
    %cst = arith.constant 0.000000e+00 : f32
    %0 = vector.broadcast %cst : f32 to vector<32x256xf32>
    %c0 = arith.constant 0 : index
    %c0_0 = arith.constant 0 : index
    %c0_1 = arith.constant 0 : index
    %1 = vector.load %arg1[%c0, %c0_0, %c0_1] : memref<1x36x108xf32, #tpu.memory_space<vmem>>, vector<1x32x108xf32>
    %2 = vector.shape_cast %1 : vector<1x32x108xf32> to vector<32x108xf32>
    %3 = arith.truncf %2 : vector<32x108xf32> to vector<32x108xbf16>
    %c0_2 = arith.constant 0 : index
    %c0_3 = arith.constant 0 : index
    %c0_4 = arith.constant 0 : index
    %4 = vector.load %arg2[%c0_2, %c0_3, %c0_4] : memref<5x108x256xbf16, #tpu.memory_space<vmem>>, vector<1x108x256xbf16>
    %5 = vector.shape_cast %4 : vector<1x108x256xbf16> to vector<108x256xbf16>
    %cst_5 = arith.constant dense<0.000000e+00> : vector<32x256xf32>
    %6 = tpu.matmul %3, %5, %cst_5 {dimension_numbers = #tpu.dot_dimension_numbers<[1], [0], [0], [1], [0, 0, 1, 1], [], []>} : vector<32x108xbf16>, vector<108x256xbf16>, vector<32x256xf32> -> vector<32x256xf32>
    %7 = arith.addf %0, %6 : vector<32x256xf32>
    %c0_6 = arith.constant 0 : index
    %c1 = arith.constant 1 : index
    %c0_7 = arith.constant 0 : index
    %8 = vector.load %arg1[%c0_6, %c1, %c0_7] : memref<1x36x108xf32, #tpu.memory_space<vmem>>, vector<1x32x108xf32>
    %9 = vector.shape_cast %8 : vector<1x32x108xf32> to vector<32x108xf32>
    %10 = arith.truncf %9 : vector<32x108xf32> to vector<32x108xbf16>
    %c1_8 = arith.constant 1 : index
    %c0_9 = arith.constant 0 : index
    %c0_10 = arith.constant 0 : index
    %11 = vector.load %arg2[%c1_8, %c0_9, %c0_10] : memref<5x108x256xbf16, #tpu.memory_space<vmem>>, vector<1x108x256xbf16>
    %12 = vector.shape_cast %11 : vector<1x108x256xbf16> to vector<108x256xbf16>
    %cst_11 = arith.constant dense<0.000000e+00> : vector<32x256xf32>
    %13 = tpu.matmul %10, %12, %cst_11 {dimension_numbers = #tpu.dot_dimension_numbers<[1], [0], [0], [1], [0, 0, 1, 1], [], []>} : vector<32x108xbf16>, vector<108x256xbf16>, vector<32x256xf32> -> vector<32x256xf32>
    %14 = arith.addf %7, %13 : vector<32x256xf32>
    %c0_12 = arith.constant 0 : index
    %c2 = arith.constant 2 : index
    %c0_13 = arith.constant 0 : index
    %15 = vector.load %arg1[%c0_12, %c2, %c0_13] : memref<1x36x108xf32, #tpu.memory_space<vmem>>, vector<1x32x108xf32>
    %16 = vector.shape_cast %15 : vector<1x32x108xf32> to vector<32x108xf32>
    %17 = arith.truncf %16 : vector<32x108xf32> to vector<32x108xbf16>
    %c2_14 = arith.constant 2 : index
    %c0_15 = arith.constant 0 : index
    %c0_16 = arith.constant 0 : index
    %18 = vector.load %arg2[%c2_14, %c0_15, %c0_16] : memref<5x108x256xbf16, #tpu.memory_space<vmem>>, vector<1x108x256xbf16>
    %19 = vector.shape_cast %18 : vector<1x108x256xbf16> to vector<108x256xbf16>
    %cst_17 = arith.constant dense<0.000000e+00> : vector<32x256xf32>
    %20 = tpu.matmul %17, %19, %cst_17 {dimension_numbers = #tpu.dot_dimension_numbers<[1], [0], [0], [1], [0, 0, 1, 1], [], []>} : vector<32x108xbf16>, vector<108x256xbf16>, vector<32x256xf32> -> vector<32x256xf32>
    %21 = arith.addf %14, %20 : vector<32x256xf32>
    %c0_18 = arith.constant 0 : index
    %c3 = arith.constant 3 : index
    %c0_19 = arith.constant 0 : index
    %22 = vector.load %arg1[%c0_18, %c3, %c0_19] : memref<1x36x108xf32, #tpu.memory_space<vmem>>, vector<1x32x108xf32>
    %23 = vector.shape_cast %22 : vector<1x32x108xf32> to vector<32x108xf32>
    %24 = arith.truncf %23 : vector<32x108xf32> to vector<32x108xbf16>
    %c3_20 = arith.constant 3 : index
    %c0_21 = arith.constant 0 : index
    %c0_22 = arith.constant 0 : index
    %25 = vector.load %arg2[%c3_20, %c0_21, %c0_22] : memref<5x108x256xbf16, #tpu.memory_space<vmem>>, vector<1x108x256xbf16>
    %26 = vector.shape_cast %25 : vector<1x108x256xbf16> to vector<108x256xbf16>
    %cst_23 = arith.constant dense<0.000000e+00> : vector<32x256xf32>
    %27 = tpu.matmul %24, %26, %cst_23 {dimension_numbers = #tpu.dot_dimension_numbers<[1], [0], [0], [1], [0, 0, 1, 1], [], []>} : vector<32x108xbf16>, vector<108x256xbf16>, vector<32x256xf32> -> vector<32x256xf32>
    %28 = arith.addf %21, %27 : vector<32x256xf32>
    %c0_24 = arith.constant 0 : index
    %c4 = arith.constant 4 : index
    %c0_25 = arith.constant 0 : index
    %29 = vector.load %arg1[%c0_24, %c4, %c0_25] : memref<1x36x108xf32, #tpu.memory_space<vmem>>, vector<1x32x108xf32>
    %30 = vector.shape_cast %29 : vector<1x32x108xf32> to vector<32x108xf32>
    %31 = arith.truncf %30 : vector<32x108xf32> to vector<32x108xbf16>
    %c4_26 = arith.constant 4 : index
    %c0_27 = arith.constant 0 : index
    %c0_28 = arith.constant 0 : index
    %32 = vector.load %arg2[%c4_26, %c0_27, %c0_28] : memref<5x108x256xbf16, #tpu.memory_space<vmem>>, vector<1x108x256xbf16>
    %33 = vector.shape_cast %32 : vector<1x108x256xbf16> to vector<108x256xbf16>
    %cst_29 = arith.constant dense<0.000000e+00> : vector<32x256xf32>
    %34 = tpu.matmul %31, %33, %cst_29 {dimension_numbers = #tpu.dot_dimension_numbers<[1], [0], [0], [1], [0, 0, 1, 1], [], []>} : vector<32x108xbf16>, vector<108x256xbf16>, vector<32x256xf32> -> vector<32x256xf32>
    %35 = arith.addf %28, %34 : vector<32x256xf32>
    %c0_30 = arith.constant 0 : index
    %c0_31 = arith.constant 0 : index
    %36 = vector.load %arg3[%c0_30, %c0_31] : memref<1x256xf32, #tpu.memory_space<vmem>>, vector<1x256xf32>
    %37 = vector.broadcast %36 : vector<1x256xf32> to vector<32x256xf32>
    %38 = arith.addf %35, %37 : vector<32x256xf32>
    %39 = arith.negf %38 : vector<32x256xf32>
    %40 = math.exp %39 : vector<32x256xf32>
    %cst_32 = arith.constant 1.000000e+00 : f32
    %41 = vector.broadcast %cst_32 : f32 to vector<32x256xf32>
    %42 = arith.addf %41, %40 : vector<32x256xf32>
    %43 = arith.divf %41, %42 : vector<32x256xf32>
    %44 = arith.mulf %38, %43 : vector<32x256xf32>
    %45 = vector.shape_cast %44 : vector<32x256xf32> to vector<16x2x256xf32>
    %cst_33 = arith.constant dense<0xFF800000> : vector<16x256xf32>
    %46 = vector.multi_reduction <maximumf>, %45, %cst_33 [1] : vector<16x2x256xf32> to vector<16x256xf32>
    %47 = vector.extract_strided_slice %46 {offsets = [0, 0], sizes = [16, 128], strides = [1, 1]} : vector<16x256xf32> to vector<16x128xf32>
    %48 = vector.extract_strided_slice %46 {offsets = [0, 128], sizes = [16, 128], strides = [1, 1]} : vector<16x256xf32> to vector<16x128xf32>
    %49 = arith.maximumf %47, %48 : vector<16x128xf32>
    %c0_34 = arith.constant 0 : index
    %c0_35 = arith.constant 0 : index
    %c0_36 = arith.constant 0 : index
    %50 = vector.load %arg4[%c0_34, %c0_35, %c0_36] : memref<1x16x128xf32, #tpu.memory_space<vmem>>, vector<1x16x128xf32>
    %51 = vector.shape_cast %50 : vector<1x16x128xf32> to vector<16x128xf32>
    %52 = vector.shape_cast %49 : vector<16x128xf32> to vector<1x16x128xf32>
    tpu.vector_store %arg4[%c0_34, %c0_35, %c0_36], %52 {strides = array<i32>} : memref<1x16x128xf32, #tpu.memory_space<vmem>>, vector<1x16x128xf32>,
    return
  }
  func.func @transform_0(%arg0: i32) -> (i32, i32, i32) {
    %c0_i32 = arith.constant 0 : i32
    %c0_i32_0 = arith.constant 0 : i32
    %c0_i32_1 = arith.constant 0 : i32
    return %arg0, %c0_i32, %c0_i32_0 : i32, i32, i32
  }
  func.func @transform_1(%arg0: i32) -> (i32, i32, i32) {
    %c0_i32 = arith.constant 0 : i32
    %c0_i32_0 = arith.constant 0 : i32
    %c0_i32_1 = arith.constant 0 : i32
    %c0_i32_2 = arith.constant 0 : i32
    return %c0_i32, %c0_i32_0, %c0_i32_1 : i32, i32, i32
  }
  func.func @transform_2(%arg0: i32) -> (i32, i32) {
    %c0_i32 = arith.constant 0 : i32
    %c0_i32_0 = arith.constant 0 : i32
    %c0_i32_1 = arith.constant 0 : i32
    return %c0_i32, %c0_i32_0 : i32, i32
  }
  func.func @transform_3(%arg0: i32) -> (i32, i32, i32) {
    %c0_i32 = arith.constant 0 : i32
    %c0_i32_0 = arith.constant 0 : i32
    %c0_i32_1 = arith.constant 0 : i32
    return %arg0, %c0_i32, %c0_i32_0 : i32, i32, i32
  }
}

module attributes {stable_mosaic.version = 11 : i64} {
  func.func @_fc_kernel(%arg0: memref<2x1024xf32, #tpu.memory_space<vmem>>, %arg1: memref<1024x128xbf16, #tpu.memory_space<vmem>>, %arg2: memref<1x128xf32, #tpu.memory_space<vmem>>, %arg3: memref<128x128xbf16, #tpu.memory_space<vmem>>, %arg4: memref<1x128xf32, #tpu.memory_space<vmem>>, %arg5: memref<128x128xbf16, #tpu.memory_space<vmem>>, %arg6: memref<1x128xf32, #tpu.memory_space<vmem>>, %arg7: memref<2x128xf32, #tpu.memory_space<vmem>>) attributes {dimension_semantics = [], scalar_prefetch = 0 : i64, scratch_operands = 0 : i64, tpu.core_type = #tpu.core_type<tc>} {
    %c0 = arith.constant 0 : index
    %c0_0 = arith.constant 0 : index
    %0 = vector.load %arg0[%c0, %c0_0] : memref<2x1024xf32, #tpu.memory_space<vmem>>, vector<2x1024xf32>
    %1 = arith.truncf %0 : vector<2x1024xf32> to vector<2x1024xbf16>
    %c0_1 = arith.constant 0 : index
    %c0_2 = arith.constant 0 : index
    %2 = vector.load %arg1[%c0_1, %c0_2] : memref<1024x128xbf16, #tpu.memory_space<vmem>>, vector<1024x128xbf16>
    %cst = arith.constant dense<0.000000e+00> : vector<2x128xf32>
    %3 = tpu.matmul %1, %2, %cst {dimension_numbers = #tpu.dot_dimension_numbers<[1], [0], [0], [1], [0, 0, 1, 1], [], []>} : vector<2x1024xbf16>, vector<1024x128xbf16>, vector<2x128xf32> -> vector<2x128xf32>
    %c0_3 = arith.constant 0 : index
    %c0_4 = arith.constant 0 : index
    %4 = vector.load %arg2[%c0_3, %c0_4] : memref<1x128xf32, #tpu.memory_space<vmem>>, vector<1x128xf32>
    %5 = vector.broadcast %4 : vector<1x128xf32> to vector<2x128xf32>
    %6 = arith.addf %3, %5 : vector<2x128xf32>
    %7 = arith.negf %6 : vector<2x128xf32>
    %8 = math.exp %7 : vector<2x128xf32>
    %cst_5 = arith.constant 1.000000e+00 : f32
    %9 = vector.broadcast %cst_5 : f32 to vector<2x128xf32>
    %10 = arith.addf %9, %8 : vector<2x128xf32>
    %11 = arith.divf %9, %10 : vector<2x128xf32>
    %12 = arith.mulf %6, %11 : vector<2x128xf32>
    %13 = arith.truncf %12 : vector<2x128xf32> to vector<2x128xbf16>
    %c0_6 = arith.constant 0 : index
    %c0_7 = arith.constant 0 : index
    %14 = vector.load %arg3[%c0_6, %c0_7] : memref<128x128xbf16, #tpu.memory_space<vmem>>, vector<128x128xbf16>
    %cst_8 = arith.constant dense<0.000000e+00> : vector<2x128xf32>
    %15 = tpu.matmul %13, %14, %cst_8 {dimension_numbers = #tpu.dot_dimension_numbers<[1], [0], [0], [1], [0, 0, 1, 1], [], []>} : vector<2x128xbf16>, vector<128x128xbf16>, vector<2x128xf32> -> vector<2x128xf32>
    %c0_9 = arith.constant 0 : index
    %c0_10 = arith.constant 0 : index
    %16 = vector.load %arg4[%c0_9, %c0_10] : memref<1x128xf32, #tpu.memory_space<vmem>>, vector<1x128xf32>
    %17 = vector.broadcast %16 : vector<1x128xf32> to vector<2x128xf32>
    %18 = arith.addf %15, %17 : vector<2x128xf32>
    %19 = arith.negf %18 : vector<2x128xf32>
    %20 = math.exp %19 : vector<2x128xf32>
    %cst_11 = arith.constant 1.000000e+00 : f32
    %21 = vector.broadcast %cst_11 : f32 to vector<2x128xf32>
    %22 = arith.addf %21, %20 : vector<2x128xf32>
    %23 = arith.divf %21, %22 : vector<2x128xf32>
    %24 = arith.mulf %18, %23 : vector<2x128xf32>
    %25 = arith.truncf %24 : vector<2x128xf32> to vector<2x128xbf16>
    %c0_12 = arith.constant 0 : index
    %c0_13 = arith.constant 0 : index
    %26 = vector.load %arg5[%c0_12, %c0_13] : memref<128x128xbf16, #tpu.memory_space<vmem>>, vector<128x128xbf16>
    %cst_14 = arith.constant dense<0.000000e+00> : vector<2x128xf32>
    %27 = tpu.matmul %25, %26, %cst_14 {dimension_numbers = #tpu.dot_dimension_numbers<[1], [0], [0], [1], [0, 0, 1, 1], [], []>} : vector<2x128xbf16>, vector<128x128xbf16>, vector<2x128xf32> -> vector<2x128xf32>
    %c0_15 = arith.constant 0 : index
    %c0_16 = arith.constant 0 : index
    %28 = vector.load %arg6[%c0_15, %c0_16] : memref<1x128xf32, #tpu.memory_space<vmem>>, vector<1x128xf32>
    %29 = vector.broadcast %28 : vector<1x128xf32> to vector<2x128xf32>
    %30 = arith.addf %27, %29 : vector<2x128xf32>
    %c0_17 = arith.constant 0 : index
    %c0_18 = arith.constant 0 : index
    %31 = vector.load %arg7[%c0_17, %c0_18] : memref<2x128xf32, #tpu.memory_space<vmem>>, vector<2x128xf32>
    tpu.vector_store %arg7[%c0_17, %c0_18], %30 {strides = array<i32>} : memref<2x128xf32, #tpu.memory_space<vmem>>, vector<2x128xf32>,
    return
  }
}

module attributes {stable_mosaic.version = 11 : i64} {
  func.func @_conv_stage_kernel(%arg0: i32, %arg1: memref<1x20x160xf32, #tpu.memory_space<vmem>>, %arg2: memref<5x160x256xbf16, #tpu.memory_space<vmem>>, %arg3: memref<1x256xf32, #tpu.memory_space<vmem>>, %arg4: memref<1x8x128xf32, #tpu.memory_space<vmem>>) attributes {dimension_semantics = [#tpu.dimension_semantics<parallel>], iteration_bounds = array<i64: 2>, scalar_prefetch = 0 : i64, scratch_operands = 0 : i64, tpu.core_type = #tpu.core_type<tc>, window_params = [{transform_indices = @transform_0, window_bounds = array<i64: 1, 20, 160>}, {pipeline_mode = #tpu.pipeline_mode<synchronous>, transform_indices = @transform_1, window_bounds = array<i64: 5, 160, 256>}, {pipeline_mode = #tpu.pipeline_mode<synchronous>, transform_indices = @transform_2, window_bounds = array<i64: 1, 256>}, {transform_indices = @transform_3, window_bounds = array<i64: 1, 8, 128>}]} {
    %cst = arith.constant 0.000000e+00 : f32
    %0 = vector.broadcast %cst : f32 to vector<16x256xf32>
    %c0 = arith.constant 0 : index
    %c0_0 = arith.constant 0 : index
    %c0_1 = arith.constant 0 : index
    %1 = vector.load %arg1[%c0, %c0_0, %c0_1] : memref<1x20x160xf32, #tpu.memory_space<vmem>>, vector<1x16x160xf32>
    %2 = vector.shape_cast %1 : vector<1x16x160xf32> to vector<16x160xf32>
    %3 = arith.truncf %2 : vector<16x160xf32> to vector<16x160xbf16>
    %c0_2 = arith.constant 0 : index
    %c0_3 = arith.constant 0 : index
    %c0_4 = arith.constant 0 : index
    %4 = vector.load %arg2[%c0_2, %c0_3, %c0_4] : memref<5x160x256xbf16, #tpu.memory_space<vmem>>, vector<1x160x256xbf16>
    %5 = vector.shape_cast %4 : vector<1x160x256xbf16> to vector<160x256xbf16>
    %cst_5 = arith.constant dense<0.000000e+00> : vector<16x256xf32>
    %6 = tpu.matmul %3, %5, %cst_5 {dimension_numbers = #tpu.dot_dimension_numbers<[1], [0], [0], [1], [0, 0, 1, 1], [], []>} : vector<16x160xbf16>, vector<160x256xbf16>, vector<16x256xf32> -> vector<16x256xf32>
    %7 = arith.addf %0, %6 : vector<16x256xf32>
    %c0_6 = arith.constant 0 : index
    %c1 = arith.constant 1 : index
    %c0_7 = arith.constant 0 : index
    %8 = vector.load %arg1[%c0_6, %c1, %c0_7] : memref<1x20x160xf32, #tpu.memory_space<vmem>>, vector<1x16x160xf32>
    %9 = vector.shape_cast %8 : vector<1x16x160xf32> to vector<16x160xf32>
    %10 = arith.truncf %9 : vector<16x160xf32> to vector<16x160xbf16>
    %c1_8 = arith.constant 1 : index
    %c0_9 = arith.constant 0 : index
    %c0_10 = arith.constant 0 : index
    %11 = vector.load %arg2[%c1_8, %c0_9, %c0_10] : memref<5x160x256xbf16, #tpu.memory_space<vmem>>, vector<1x160x256xbf16>
    %12 = vector.shape_cast %11 : vector<1x160x256xbf16> to vector<160x256xbf16>
    %cst_11 = arith.constant dense<0.000000e+00> : vector<16x256xf32>
    %13 = tpu.matmul %10, %12, %cst_11 {dimension_numbers = #tpu.dot_dimension_numbers<[1], [0], [0], [1], [0, 0, 1, 1], [], []>} : vector<16x160xbf16>, vector<160x256xbf16>, vector<16x256xf32> -> vector<16x256xf32>
    %14 = arith.addf %7, %13 : vector<16x256xf32>
    %c0_12 = arith.constant 0 : index
    %c2 = arith.constant 2 : index
    %c0_13 = arith.constant 0 : index
    %15 = vector.load %arg1[%c0_12, %c2, %c0_13] : memref<1x20x160xf32, #tpu.memory_space<vmem>>, vector<1x16x160xf32>
    %16 = vector.shape_cast %15 : vector<1x16x160xf32> to vector<16x160xf32>
    %17 = arith.truncf %16 : vector<16x160xf32> to vector<16x160xbf16>
    %c2_14 = arith.constant 2 : index
    %c0_15 = arith.constant 0 : index
    %c0_16 = arith.constant 0 : index
    %18 = vector.load %arg2[%c2_14, %c0_15, %c0_16] : memref<5x160x256xbf16, #tpu.memory_space<vmem>>, vector<1x160x256xbf16>
    %19 = vector.shape_cast %18 : vector<1x160x256xbf16> to vector<160x256xbf16>
    %cst_17 = arith.constant dense<0.000000e+00> : vector<16x256xf32>
    %20 = tpu.matmul %17, %19, %cst_17 {dimension_numbers = #tpu.dot_dimension_numbers<[1], [0], [0], [1], [0, 0, 1, 1], [], []>} : vector<16x160xbf16>, vector<160x256xbf16>, vector<16x256xf32> -> vector<16x256xf32>
    %21 = arith.addf %14, %20 : vector<16x256xf32>
    %c0_18 = arith.constant 0 : index
    %c3 = arith.constant 3 : index
    %c0_19 = arith.constant 0 : index
    %22 = vector.load %arg1[%c0_18, %c3, %c0_19] : memref<1x20x160xf32, #tpu.memory_space<vmem>>, vector<1x16x160xf32>
    %23 = vector.shape_cast %22 : vector<1x16x160xf32> to vector<16x160xf32>
    %24 = arith.truncf %23 : vector<16x160xf32> to vector<16x160xbf16>
    %c3_20 = arith.constant 3 : index
    %c0_21 = arith.constant 0 : index
    %c0_22 = arith.constant 0 : index
    %25 = vector.load %arg2[%c3_20, %c0_21, %c0_22] : memref<5x160x256xbf16, #tpu.memory_space<vmem>>, vector<1x160x256xbf16>
    %26 = vector.shape_cast %25 : vector<1x160x256xbf16> to vector<160x256xbf16>
    %cst_23 = arith.constant dense<0.000000e+00> : vector<16x256xf32>
    %27 = tpu.matmul %24, %26, %cst_23 {dimension_numbers = #tpu.dot_dimension_numbers<[1], [0], [0], [1], [0, 0, 1, 1], [], []>} : vector<16x160xbf16>, vector<160x256xbf16>, vector<16x256xf32> -> vector<16x256xf32>
    %28 = arith.addf %21, %27 : vector<16x256xf32>
    %c0_24 = arith.constant 0 : index
    %c4 = arith.constant 4 : index
    %c0_25 = arith.constant 0 : index
    %29 = vector.load %arg1[%c0_24, %c4, %c0_25] : memref<1x20x160xf32, #tpu.memory_space<vmem>>, vector<1x16x160xf32>
    %30 = vector.shape_cast %29 : vector<1x16x160xf32> to vector<16x160xf32>
    %31 = arith.truncf %30 : vector<16x160xf32> to vector<16x160xbf16>
    %c4_26 = arith.constant 4 : index
    %c0_27 = arith.constant 0 : index
    %c0_28 = arith.constant 0 : index
    %32 = vector.load %arg2[%c4_26, %c0_27, %c0_28] : memref<5x160x256xbf16, #tpu.memory_space<vmem>>, vector<1x160x256xbf16>
    %33 = vector.shape_cast %32 : vector<1x160x256xbf16> to vector<160x256xbf16>
    %cst_29 = arith.constant dense<0.000000e+00> : vector<16x256xf32>
    %34 = tpu.matmul %31, %33, %cst_29 {dimension_numbers = #tpu.dot_dimension_numbers<[1], [0], [0], [1], [0, 0, 1, 1], [], []>} : vector<16x160xbf16>, vector<160x256xbf16>, vector<16x256xf32> -> vector<16x256xf32>
    %35 = arith.addf %28, %34 : vector<16x256xf32>
    %c0_30 = arith.constant 0 : index
    %c0_31 = arith.constant 0 : index
    %36 = vector.load %arg3[%c0_30, %c0_31] : memref<1x256xf32, #tpu.memory_space<vmem>>, vector<1x256xf32>
    %37 = vector.broadcast %36 : vector<1x256xf32> to vector<16x256xf32>
    %38 = arith.addf %35, %37 : vector<16x256xf32>
    %39 = arith.negf %38 : vector<16x256xf32>
    %40 = math.exp %39 : vector<16x256xf32>
    %cst_32 = arith.constant 1.000000e+00 : f32
    %41 = vector.broadcast %cst_32 : f32 to vector<16x256xf32>
    %42 = arith.addf %41, %40 : vector<16x256xf32>
    %43 = arith.divf %41, %42 : vector<16x256xf32>
    %44 = arith.mulf %38, %43 : vector<16x256xf32>
    %45 = vector.shape_cast %44 : vector<16x256xf32> to vector<8x2x256xf32>
    %cst_33 = arith.constant dense<0xFF800000> : vector<8x256xf32>
    %46 = vector.multi_reduction <maximumf>, %45, %cst_33 [1] : vector<8x2x256xf32> to vector<8x256xf32>
    %47 = vector.extract_strided_slice %46 {offsets = [0, 0], sizes = [8, 128], strides = [1, 1]} : vector<8x256xf32> to vector<8x128xf32>
    %48 = vector.extract_strided_slice %46 {offsets = [0, 128], sizes = [8, 128], strides = [1, 1]} : vector<8x256xf32> to vector<8x128xf32>
    %49 = arith.maximumf %47, %48 : vector<8x128xf32>
    %c0_34 = arith.constant 0 : index
    %c0_35 = arith.constant 0 : index
    %c0_36 = arith.constant 0 : index
    %50 = vector.load %arg4[%c0_34, %c0_35, %c0_36] : memref<1x8x128xf32, #tpu.memory_space<vmem>>, vector<1x8x128xf32>
    %51 = vector.shape_cast %50 : vector<1x8x128xf32> to vector<8x128xf32>
    %52 = vector.shape_cast %49 : vector<8x128xf32> to vector<1x8x128xf32>
    tpu.vector_store %arg4[%c0_34, %c0_35, %c0_36], %52 {strides = array<i32>} : memref<1x8x128xf32, #tpu.memory_space<vmem>>, vector<1x8x128xf32>,
    return
  }
  func.func @transform_0(%arg0: i32) -> (i32, i32, i32) {
    %c0_i32 = arith.constant 0 : i32
    %c0_i32_0 = arith.constant 0 : i32
    %c0_i32_1 = arith.constant 0 : i32
    return %arg0, %c0_i32, %c0_i32_0 : i32, i32, i32
  }
  func.func @transform_1(%arg0: i32) -> (i32, i32, i32) {
    %c0_i32 = arith.constant 0 : i32
    %c0_i32_0 = arith.constant 0 : i32
    %c0_i32_1 = arith.constant 0 : i32
    %c0_i32_2 = arith.constant 0 : i32
    return %c0_i32, %c0_i32_0, %c0_i32_1 : i32, i32, i32
  }
  func.func @transform_2(%arg0: i32) -> (i32, i32) {
    %c0_i32 = arith.constant 0 : i32
    %c0_i32_0 = arith.constant 0 : i32
    %c0_i32_1 = arith.constant 0 : i32
    return %c0_i32, %c0_i32_0 : i32, i32
  }
  func.func @transform_3(%arg0: i32) -> (i32, i32, i32) {
    %c0_i32 = arith.constant 0 : i32
    %c0_i32_0 = arith.constant 0 : i32
    %c0_i32_1 = arith.constant 0 : i32
    return %arg0, %c0_i32, %c0_i32_0 : i32, i32, i32
  }
}

</mosaic_0001>

<bundles_post_ra>
// kernel: net_forward.5
= control target key start
LH: loop header
LB: loop body
LE: loop exit
PB: predicated region body
PF: predicated region fallthrough
CT: control target
= control target key end

     0   :  { %v36_v28 = vlaneseq  ;;  %v1363_v36 = vmov 1983009808   ;;  %s1698_s0 = inlined_call_operand.vmem [shape: f32[2,1024], index: 0, kind: input, shape index: {}]   ;;  %s1699_s1 = inlined_call_operand.vmem [shape: bf16[1024,128], index: 1, kind: input, shape index: {}]   ;;  %s1700_s2 = inlined_call_operand.vmem [shape: f32[1,128], index: 2, kind: input, shape index: {}]   ;;  %s1701_s3 = inlined_call_operand.vmem [shape: bf16[128,128], index: 3, kind: input, shape index: {}]   ;;  %s1702_s4 = inlined_call_operand.vmem [shape: f32[1,128], index: 4, kind: input, shape index: {}]   ;;  %s1703_s5 = inlined_call_operand.vmem [shape: bf16[128,128], index: 5, kind: input, shape index: {}]   ;;  %s1704_s6 = inlined_call_operand.vmem [shape: f32[1,128], index: 6, kind: input, shape index: {}]   ;;  %s1705_s7 = inlined_call_operand.hbm [shape: f32[2,128], index: 7, kind: output, shape index: {}]  }
   0x1   :  { %v1249_v0 = vld [vmem:[%s1699_s1 + $0x40] sm:$0xff]   ;;  %v1253_v4 = vld [vmem:[%s1699_s1 + $0x48] sm:$0xff]   ;;  %v1257_v8 = vld [vmem:[%s1699_s1 + $0x50] sm:$0xff]   ;;  %v34_v37 = vunpack.c.l.s4 %v1363_v36 }
   0x2   :  { %v1250_v1 = vld [vmem:[%s1699_s1 + $0xc0] sm:$0xff]   ;;  %1099 = vmatprep.subr.bf16.mxu0 %v1249_v0  ;;  %v1254_v5 = vld [vmem:[%s1699_s1 + $0xc8] sm:$0xff]   ;;  %v1258_v9 = vld [vmem:[%s1699_s1 + $0xd0] sm:$0xff]   ;;  %v37_v33 = vshrl.u32 %v36_v28, 7 }
   0x3   :  { %v1251_v2 = vld [vmem:[%s1699_s1] sm:$0xff]   ;;  %1121 = vmatprep.subr.bf16.mxu1 %v1250_v1  ;;  %v1255_v6 = vld [vmem:[%s1699_s1 + $0x8] sm:$0xff]   ;;  %v1259_v10 = vld [vmem:[%s1699_s1 + $0x10] sm:$0xff]   ;;  %v35_v39 = vunpack.c.0.s8 %v34_v37 }
   0x4   :  { %v1252_v3 = vld [vmem:[%s1699_s1 + $0x80] sm:$0xff]   ;;  %1100 = vmatpush3.bf16.msra.mxu0 %v1251_v2  ;;  %v1256_v7 = vld [vmem:[%s1699_s1 + $0x88] sm:$0xff]   ;;  %v1260_v11 = vld [vmem:[%s1699_s1 + $0x90] sm:$0xff]  }
   0x5   :  { %1122 = vmatpush3.bf16.msra.mxu1 %v1252_v3  ;;  %1101 = vmatprep.subr.bf16.mxu0 %v1253_v4  ;;  %v1261_v12 = vld [vmem:[%s1699_s1 + $0x58] sm:$0xff]   ;;  %v1265_v16 = vld [vmem:[%s1699_s1 + $0x60] sm:$0xff]   ;;  %v1269_v20 = vld [vmem:[%s1699_s1 + $0x68] sm:$0xff]   ;;  %v1512_v41 = vsub.s32 %v35_v39, %v37_v33 }
   0x6   :  { %1123 = vmatprep.subr.bf16.mxu1 %v1254_v5  ;;  %v1262_v13 = vld [vmem:[%s1699_s1 + $0xd8] sm:$0xff]   ;;  %v1266_v17 = vld [vmem:[%s1699_s1 + $0xe0] sm:$0xff]   ;;  %v1270_v21 = vld [vmem:[%s1699_s1 + $0xe8] sm:$0xff]  }
   0x7   :  { %v1263_v14 = vld [vmem:[%s1699_s1 + $0x18] sm:$0xff]   ;;  %v1267_v18 = vld [vmem:[%s1699_s1 + $0x20] sm:$0xff]   ;;  %v1271_v22 = vld [vmem:[%s1699_s1 + $0x28] sm:$0xff]  }
   0x8   :  { %1102 = vmatpush3.bf16.msra.mxu0 %v1255_v6  ;;  %v1264_v15 = vld [vmem:[%s1699_s1 + $0x98] sm:$0xff]   ;;  %v1268_v19 = vld [vmem:[%s1699_s1 + $0xa0] sm:$0xff]   ;;  %v1272_v23 = vld [vmem:[%s1699_s1 + $0xa8] sm:$0xff]  }
   0x9   :  { %1124 = vmatpush3.bf16.msra.mxu1 %v1256_v7  ;;  %1103 = vmatprep.subr.bf16.mxu0 %v1257_v8  ;;  %v1273_v24 = vld [vmem:[%s1699_s1 + $0x70] sm:$0xff]   ;;  %v1277_v29 = vld [vmem:[%s1699_s1 + $0x78] sm:$0xff]   ;;  %v28_v34 = vld [vmem:[%s1698_s0] sm:$0xff] }
   0xa   :  { %1125 = vmatprep.subr.bf16.mxu1 %v1258_v9  ;;  %v1274_v25 = vld [vmem:[%s1699_s1 + $0xf0] sm:$0xff]   ;;  %v1278_v30 = vld [vmem:[%s1699_s1 + $0xf8] sm:$0xff]   ;;  %v1282_v35 = vld [vmem:[%s1699_s1 + $0x140] sm:$0xff]   ;;  %v32_v40 = vcombine.high %v28_v34, %v28_v34  ;;  %v39_v42 = vrot.slane %v28_v34, %v1512_v41 }
   0xb   :  { %v1275_v26 = vld [vmem:[%s1699_s1 + $0x30] sm:$0xff]   ;;  %v1279_v31 = vld [vmem:[%s1699_s1 + $0x38] sm:$0xff]   ;;  %v1283_v38 = vld [vmem:[%s1699_s1 + $0x1c0] sm:$0xff]  }
   0xc   :  { %1104 = vmatpush3.bf16.msra.mxu0 %v1259_v10  ;;  %v1276_v27 = vld [vmem:[%s1699_s1 + $0xb0] sm:$0xff]   ;;  %v1280_v32 = vld [vmem:[%s1699_s1 + $0xb8] sm:$0xff]   ;;  %v46_v43 = vrot.slane %v32_v40, %v1512_v41  ;;  %v47_v44 = vcombine.high %v39_v42, %v39_v42  ;;  %v1284_v46 = vld [vmem:[%s1699_s1 + $0x100] sm:$0xff]   ;;  %v74_v47 = vpack.c.bf16 %v39_v42, %v39_v42 }
   0xd   :  { %1126 = vmatpush3.bf16.msra.mxu1 %v1260_v11  ;;  %1105 = vmatprep.subr.bf16.mxu0 %v1261_v12  ;;  %v1285_v49 = vld [vmem:[%s1699_s1 + $0x180] sm:$0xff]   ;;  %v1286_v52 = vld [vmem:[%s1699_s1 + $0x148] sm:$0xff]   ;;  %v1290_v56 = vld [vmem:[%s1699_s1 + $0x150] sm:$0xff]  }
   0xe   :  { %1127 = vmatprep.subr.bf16.mxu1 %v1262_v13  ;;  %v48_v45 = vcombine.high %v46_v43, %v46_v43  ;;  %v76_v48 = vpack.c.bf16 %v46_v43, %v46_v43  ;;  %v75_v50 = vpack.c.bf16 %v47_v44, %v47_v44  ;;  %v1287_v53 = vld [vmem:[%s1699_s1 + $0x1c8] sm:$0xff]   ;;  %v1291_v57 = vld [vmem:[%s1699_s1 + $0x1d0] sm:$0xff]   ;;  %v1294_v60 = vld [vmem:[%s1699_s1 + $0x158] sm:$0xff]  }
   0xf   :  { %v1288_v54 = vld [vmem:[%s1699_s1 + $0x108] sm:$0xff]   ;;  %v1292_v58 = vld [vmem:[%s1699_s1 + $0x110] sm:$0xff]   ;;  %v1295_v61 = vld [vmem:[%s1699_s1 + $0x1d8] sm:$0xff]  }
  0x10   :  { %1106 = vmatpush3.bf16.msra.mxu0 %v1263_v14  ;;  %v77_v51 = vpack.c.bf16 %v48_v45, %v48_v45  ;;  %633 = vmatprep.mubr.bf16.mxu0 %v75_v50  ;;  %v1289_v55 = vld [vmem:[%s1699_s1 + $0x188] sm:$0xff]   ;;  %v1293_v59 = vld [vmem:[%s1699_s1 + $0x190] sm:$0xff]   ;;  %v1296_v62 = vld [vmem:[%s1699_s1 + $0x118] sm:$0xff]  }
  0x11   :  { %1128 = vmatpush3.bf16.msra.mxu1 %v1264_v15  ;;  %1107 = vmatprep.subr.bf16.mxu0 %v1265_v16  ;;  %v1297_v63 = vld [vmem:[%s1699_s1 + $0x198] sm:$0xff]   ;;  %v1298_v0 = vld [vmem:[%s1699_s1 + $0x160] sm:$0xff]   ;;  %v1302_v4 = vld [vmem:[%s1699_s1 + $0x168] sm:$0xff]  }
  0x12   :  { %1129 = vmatprep.subr.bf16.mxu1 %v1266_v17  ;;  %673 = vmatprep.mubr.bf16.mxu1 %v77_v51  ;;  %v1299_v1 = vld [vmem:[%s1699_s1 + $0x1e0] sm:$0xff]   ;;  %v1303_v5 = vld [vmem:[%s1699_s1 + $0x1e8] sm:$0xff]   ;;  %v1306_v8 = vld [vmem:[%s1699_s1 + $0x170] sm:$0xff]  }
  0x13   :  { %v1300_v2 = vld [vmem:[%s1699_s1 + $0x120] sm:$0xff]   ;;  %v1304_v6 = vld [vmem:[%s1699_s1 + $0x128] sm:$0xff]   ;;  %v1307_v9 = vld [vmem:[%s1699_s1 + $0x1f0] sm:$0xff]  }
  0x14   :  { %1108 = vmatpush3.bf16.msra.mxu0 %v1267_v18  ;;  %v1301_v3 = vld [vmem:[%s1699_s1 + $0x1a0] sm:$0xff]   ;;  %v1305_v7 = vld [vmem:[%s1699_s1 + $0x1a8] sm:$0xff]   ;;  %v1308_v11 = vld [vmem:[%s1699_s1 + $0x130] sm:$0xff]  }
  0x15   :  { %1130 = vmatpush3.bf16.msra.mxu1 %v1268_v19  ;;  %1109 = vmatprep.subr.bf16.mxu0 %v1269_v20  ;;  %v29_v10 = vld [vmem:[%s1698_s0 + $0x8] sm:$0xff]  ;;  %v1309_v12 = vld [vmem:[%s1699_s1 + $0x1b0] sm:$0xff]   ;;  %v1310_v15 = vld [vmem:[%s1699_s1 + $0x178] sm:$0xff]  }
  0x16   :  { %1131 = vmatprep.subr.bf16.mxu1 %v1270_v21  ;;  %v56_v13 = vrot.slane %v29_v10, %v1512_v41  ;;  %v49_v14 = vcombine.high %v29_v10, %v29_v10  ;;  %v1311_v16 = vld [vmem:[%s1699_s1 + $0x1f8] sm:$0xff]  }
  0x17   :  { %v1312_v19 = vld [vmem:[%s1699_s1 + $0x138] sm:$0xff]  }
  0x18   :  { %1110 = vmatpush3.bf16.msra.mxu0 %v1271_v22  ;;  %v64_v17 = vcombine.high %v56_v13, %v56_v13  ;;  %v63_v18 = vrot.slane %v49_v14, %v1512_v41  ;;  %v1313_v20 = vld [vmem:[%s1699_s1 + $0x1b8] sm:$0xff]  }
  0x19   :  { %1132 = vmatpush3.bf16.msra.mxu1 %v1272_v23  ;;  %1111 = vmatprep.subr.bf16.mxu0 %v1273_v24  ;;  %v78_v24 = vpack.c.bf16 %v56_v13, %v56_v13 }
  0x1a   :  { %1133 = vmatprep.subr.bf16.mxu1 %v1274_v25  ;;  %v79_v21 = vpack.c.bf16 %v64_v17, %v64_v17  ;;  %v65_v22 = vcombine.high %v63_v18, %v63_v18  ;;  %v80_v25 = vpack.c.bf16 %v63_v18, %v63_v18 }
  0x1c   :  { %1112 = vmatpush3.bf16.msra.mxu0 %v1275_v26  ;;  %v81_v23 = vpack.c.bf16 %v65_v22, %v65_v22 }
  0x1d   :  { %1134 = vmatpush3.bf16.msra.mxu1 %v1276_v27  ;;  %1113 = vmatprep.subr.bf16.mxu0 %v1277_v29 }
  0x1e   :  { %1135 = vmatprep.subr.bf16.mxu1 %v1278_v30 }
  0x20   :  { %1114 = vmatpush3.bf16.msra.mxu0 %v1279_v31 }
  0x21   :  { %1136 = vmatpush3.bf16.msra.mxu1 %v1280_v32  ;;  %1143 = vmatprep.subr.bf16.mxu0 %v1282_v35 }
  0x22   :  { %1165 = vmatprep.subr.bf16.mxu1 %v1283_v38 }
  0x23   :  { %634 = vmatmul.mubr.bf16.vlgmr.msra.gmra.mrb[0].mxu0 %v74_v47 }
  0x24   :  { %674 = vmatmul.mubr.bf16.vlgmr.msra.gmra.mrb[0].mxu1 %v76_v48  ;;  %1144 = vmatpush3.bf16.msra.mxu0 %v1284_v46 }
  0x25   :  { %1166 = vmatpush3.bf16.msra.mxu1 %v1285_v49  ;;  %1145 = vmatprep.subr.bf16.mxu0 %v1286_v52 }
  0x26   :  { %1167 = vmatprep.subr.bf16.mxu1 %v1287_v53  ;;  %713 = vmatprep.mubr.bf16.mxu0 %v79_v21 }
  0x27   :  { %753 = vmatprep.mubr.bf16.mxu1 %v81_v23 }
  0x28   :  { %1146 = vmatpush3.bf16.msra.mxu0 %v1288_v54 }
  0x29   :  { %1168 = vmatpush3.bf16.msra.mxu1 %v1289_v55  ;;  %1147 = vmatprep.subr.bf16.mxu0 %v1290_v56 }
  0x2a   :  { %1169 = vmatprep.subr.bf16.mxu1 %v1291_v57 }
  0x2c   :  { %1148 = vmatpush3.bf16.msra.mxu0 %v1292_v58 }
  0x2d   :  { %1170 = vmatpush3.bf16.msra.mxu1 %v1293_v59  ;;  %1149 = vmatprep.subr.bf16.mxu0 %v1294_v60 }
  0x2e   :  { %1171 = vmatprep.subr.bf16.mxu1 %v1295_v61 }
  0x30   :  { %1150 = vmatpush3.bf16.msra.mxu0 %v1296_v62 }
  0x31   :  { %1172 = vmatpush3.bf16.msra.mxu1 %v1297_v63  ;;  %1151 = vmatprep.subr.bf16.mxu0 %v1298_v0 }
  0x32   :  { %1173 = vmatprep.subr.bf16.mxu1 %v1299_v1 }
  0x34   :  { %1152 = vmatpush3.bf16.msra.mxu0 %v1300_v2 }
  0x35   :  { %1174 = vmatpush3.bf16.msra.mxu1 %v1301_v3  ;;  %1153 = vmatprep.subr.bf16.mxu0 %v1302_v4 }
  0x36   :  { %1175 = vmatprep.subr.bf16.mxu1 %v1303_v5 }
  0x38   :  { %1154 = vmatpush3.bf16.msra.mxu0 %v1304_v6 }
  0x39   :  { %1176 = vmatpush3.bf16.msra.mxu1 %v1305_v7  ;;  %1155 = vmatprep.subr.bf16.mxu0 %v1306_v8 }
  0x3a   :  { %1177 = vmatprep.subr.bf16.mxu1 %v1307_v9 }
  0x3c   :  { %1156 = vmatpush3.bf16.msra.mxu0 %v1308_v11 }
  0x3d   :  { %1178 = vmatpush3.bf16.msra.mxu1 %v1309_v12  ;;  %1157 = vmatprep.subr.bf16.mxu0 %v1310_v15 }
  0x3e   :  { %1179 = vmatprep.subr.bf16.mxu1 %v1311_v16 }
  0x40   :  { %1158 = vmatpush3.bf16.msra.mxu0 %v1312_v19 }
  0x41   :  { %1180 = vmatpush3.bf16.msra.mxu1 %v1313_v20 }
  0x42   :  { %12 = vsyncpa [#allocation3], 0  ;;  %v1315_v26 = vld [vmem:[%s1701_s3] sm:$0xff]   ;;  %v1364_v27 = vmov 0.0   ;;  %v1316_v28 = vld [vmem:[%s1701_s3 + $0x8] sm:$0xff]   ;;  %vm1365_vm0 = vmmov 0  }
  0x43   :  { %714 = vmatmul.mubr.bf16.vlgmr.msra.gmra.mrb[4].mxu0 %v78_v24  ;;  %1205 = vmatprep.subr.bf16.mxu0 %v1364_v27  ;;  %v1317_v29 = vld [vmem:[%s1701_s3 + $0x10] sm:$0xff]   ;;  %v1318_v30 = vld [vmem:[%s1701_s3 + $0x18] sm:$0xff]   ;;  %v1319_v31 = vld [vmem:[%s1701_s3 + $0x20] sm:$0xff]   ;;  %s1366_s26 = smov [#allocation2]  }
  0x44   :  { %754 = vmatmul.mubr.bf16.vlgmr.msra.gmra.mrb[4].mxu1 %v80_v25  ;;  %1225 = vmatprep.subr.bf16.mxu1 %v1364_v27  ;;  %v1320_v32 = vld [vmem:[%s1701_s3 + $0x28] sm:$0xff]   ;;  %v1321_v33 = vld [vmem:[%s1701_s3 + $0x30] sm:$0xff]   ;;  %v1322_v34 = vld [vmem:[%s1701_s3 + $0x38] sm:$0xff]  }
  0x45   :  { %1206 = vmatpush3.bf16.msra.mxu0 %v1315_v26  ;;  %1221 = vmatprep.mubr.msk.bf16.mxu0 %vm1365_vm0, %v1364_v27  ;;  %v1014_v37 = vld [vmem:[%s1700_s2] ss:$0 sm:$0xff]  ;;  %v1324_v3 = vld [vmem:[%s1703_s5 + $0x8] sm:$0xff]   ;;  %v1325_v4 = vld [vmem:[%s1703_s5 + $0x10] sm:$0xff]  }
  0x46   :  { %1207 = vmatprep.subr.bf16.mxu0 %v1364_v27  ;;  %1241 = vmatprep.mubr.msk.bf16.mxu1 %vm1365_vm0, %v1364_v27  ;;  %v1323_v2 = vld [vmem:[%s1703_s5] sm:$0xff]   ;;  %v1326_v5 = vld [vmem:[%s1703_s5 + $0x18] sm:$0xff]   ;;  %v1328_v7 = vld [vmem:[%s1703_s5 + $0x28] sm:$0xff]  }
  0x47   :  { %1226 = vmatpush3.bf16.msra.mxu1 %v1323_v2  ;;  %v1327_v6 = vld [vmem:[%s1703_s5 + $0x20] sm:$0xff]   ;;  %v1329_v8 = vld [vmem:[%s1703_s5 + $0x30] sm:$0xff]   ;;  %v1330_v9 = vld [vmem:[%s1703_s5 + $0x38] sm:$0xff]  }
  0x48   :  { %1227 = vmatprep.subr.bf16.mxu1 %v1364_v27  ;;  %v1080_v10 = vld [vmem:[%s1702_s4] ss:$0 sm:$0xff]  ;;  %s1006_s4 = sshll.u32 %s1366_s26, 4  ;;  %s1007_s4 = int_to_ptr.vmem [resolvable:$true] %s1006_s4 }
  0x49   :  { %1208 = vmatpush3.bf16.msra.mxu0 %v1316_v28  ;;  %v1090_v22 = vld [vmem:[%s1704_s6] ss:$0 sm:$0xff]  ;;  %s1339_s27 = scalar_lea.vmem %s1007_s4, 32  ;;  %p1344_p1 = scmp.lt.s32.totalorder %s1007_s4, %s1007_s4 }
  0x4a   :  { %1209 = vmatprep.subr.bf16.mxu0 %v1364_v27  ;;  %p1340_p0 = scmp.ne.s32.totalorder %s1007_s4, %s1339_s27  ;;  %p1345_p2 = scmp.lt.s32.totalorder %s1339_s27, %s1339_s27 }
  0x4b   :  { %1228 = vmatpush3.bf16.msra.mxu1 %v1324_v3 }
  0x4c   :  { %1229 = vmatprep.subr.bf16.mxu1 %v1364_v27  ;;  %p1346_p3 = por %p1345_p2, %p1344_p1 }
  0x4d   :  { %1210 = vmatpush3.bf16.msra.mxu0 %v1317_v29 }
  0x4e   :  { %1211 = vmatprep.subr.bf16.mxu0 %v1364_v27  ;;  %p1347_p4 = pnand %p1346_p3, %p1340_p0 }
  0x4f   :  { %1230 = vmatpush3.bf16.msra.mxu1 %v1325_v4 }
  0x50   :  { %1231 = vmatprep.subr.bf16.mxu1 %v1364_v27 }
  0x51   :  { %1212 = vmatpush3.bf16.msra.mxu0 %v1318_v30 }
  0x52   :  { %1213 = vmatprep.subr.bf16.mxu0 %v1364_v27 }
  0x53   :  { %1232 = vmatpush3.bf16.msra.mxu1 %v1326_v5 }
  0x54   :  { %1233 = vmatprep.subr.bf16.mxu1 %v1364_v27 }
  0x55   :  { %1214 = vmatpush3.bf16.msra.mxu0 %v1319_v31 }
  0x56   :  { %1215 = vmatprep.subr.bf16.mxu0 %v1364_v27 }
  0x57   :  { %1234 = vmatpush3.bf16.msra.mxu1 %v1327_v6 }
  0x58   :  { %1235 = vmatprep.subr.bf16.mxu1 %v1364_v27 }
  0x59   :  { %1216 = vmatpush3.bf16.msra.mxu0 %v1320_v32 }
  0x5a   :  { %1217 = vmatprep.subr.bf16.mxu0 %v1364_v27 }
  0x5b   :  { %1236 = vmatpush3.bf16.msra.mxu1 %v1328_v7 }
  0x5c   :  { %1237 = vmatprep.subr.bf16.mxu1 %v1364_v27 }
  0x5d   :  { %1218 = vmatpush3.bf16.msra.mxu0 %v1321_v33 }
  0x5e   :  { %1219 = vmatprep.subr.bf16.mxu0 %v1364_v27 }
  0x5f   :  { %1238 = vmatpush3.bf16.msra.mxu1 %v1329_v8 }
  0x60   :  { %1239 = vmatprep.subr.bf16.mxu1 %v1364_v27 }
  0x61   :  { %1220 = vmatpush3.bf16.msra.mxu0 %v1322_v34 }
  0x63   :  { %1240 = vmatpush3.bf16.msra.mxu1 %v1330_v9 }
  0xf6   :  { %v1115_v35 = vpop.f32.mrb[0].mxu0 }
  0xf7   :  { %v1137_v36 = vpop.f32.mrb[0].mxu1  ;;  %v1116_v38 = vpop.f32.mrb[1].mxu0 }
  0xf8   :  { %v1138_v39 = vpop.f32.mrb[1].mxu1  ;;  %v1117_v40 = vadd.f32 %v1116_v38, %v1115_v35  ;;  %v1118_v42 = vpop.f32.mrb[2].mxu0 }
  0xf9   :  { %v1139_v41 = vadd.f32 %v1138_v39, %v1137_v36  ;;  %v1140_v43 = vpop.f32.mrb[2].mxu1  ;;  %v1119_v44 = vpop.f32.mrb[3].mxu0 }
  0xfa   :  { %v1141_v45 = vpop.f32.mrb[3].mxu1  ;;  %v636_v46 = vadd.f32 %v1117_v40, %v1014_v37 }
  0xfc   :  { %v676_v47 = vadd.f32 %v1139_v41, %v636_v46 }
 0x116   :  { %v1159_v48 = vpop.f32.mrb[4].mxu0 }
 0x117   :  { %v1181_v49 = vpop.f32.mrb[4].mxu1  ;;  %v1160_v50 = vpop.f32.mrb[5].mxu0 }
 0x118   :  { %v1182_v51 = vpop.f32.mrb[5].mxu1  ;;  %v1161_v52 = vadd.f32 %v1160_v50, %v1159_v48  ;;  %v1162_v54 = vpop.f32.mrb[6].mxu0 }
 0x119   :  { %v1183_v53 = vadd.f32 %v1182_v51, %v1181_v49  ;;  %v1184_v55 = vpop.f32.mrb[6].mxu1  ;;  %v1163_v56 = vpop.f32.mrb[7].mxu0 }
 0x11a   :  { %v1185_v57 = vpop.f32.mrb[7].mxu1  ;;  %v716_v58 = vadd.f32 %v1161_v52, %v676_v47 }
 0x11c   :  { %v756_v59 = vadd.f32 %v1183_v53, %v716_v58 }
 0x11e   :  { %v1079_v60 = vmul.f32 -1.442695, %v756_v59 }
 0x120   :  { %1331 = vpow2.f32 %v1079_v60 }
 0x12a   :  { %v1332_v61 = vpop.eup %1331 }
 0x12b   :  { %v764_v62 = vadd.f32 1.0, %v1332_v61 }
 0x12d   :  { %1333 = vrcp.f32 %v764_v62 }
 0x137   :  { %v1334_v63 = vpop.eup %1333 }
 0x138   :  { %v767_v0 = vmul.f32 %v1334_v63, %v756_v59 }
 0x13a   :  { %v768_v1 = vpack.c.bf16 %v767_v0, %v767_v0 }
 0x13c   :  { %1222 = vmatmul.mubr.bf16.vlgmr.msra.gmra.mrb[8].mxu0 %v768_v1 }
 0x20f   :  { %v874_v11 = vpop.f32.mrb[8].mxu0 }
 0x210   :  { %v875_v12 = vadd.f32 %v1080_v10, %v874_v11  ;;  %v1223_v13 = vpop.f32.mrb[9].mxu0 }
 0x211   :  { %v877_v14 = vpop.f32.mrb[10].mxu0 }
 0x212   :  { %v1089_v15 = vmul.f32 -1.442695, %v875_v12  ;;  %v1224_v16 = vpop.f32.mrb[11].mxu0 }
 0x214   :  { %1335 = vpow2.f32 %v1089_v15 }
 0x21e   :  { %v1336_v17 = vpop.eup %1335 }
 0x21f   :  { %v883_v18 = vadd.f32 1.0, %v1336_v17 }
 0x221   :  { %1337 = vrcp.f32 %v883_v18 }
 0x22b   :  { %v1338_v19 = vpop.eup %1337 }
 0x22c   :  { %v886_v20 = vmul.f32 %v1338_v19, %v875_v12 }
 0x22e   :  { %v887_v21 = vpack.c.bf16 %v886_v20, %v886_v20 }
 0x230   :  { %1242 = vmatmul.mubr.bf16.vlgmr.msra.gmra.mrb[8].mxu1 %v887_v21 }
 0x303   :  { %v993_v23 = vpop.f32.mrb[8].mxu1 }
 0x304   :  { %v994_v24 = vadd.f32 %v1090_v22, %v993_v23  ;;  %v1243_v25 = vpop.f32.mrb[9].mxu1 }
 0x305   :  { %v996_v26 = vpop.f32.mrb[10].mxu1 }
 0x306   :  { %999 = vst [vmem:[#allocation2] sm:$0x3] %v994_v24  ;;  %v1244_v27 = vpop.f32.mrb[11].mxu1 }
 0x307   :  { %1350 = shalt.err (!%p1347_p4)
}
 0x308   :  { %s1351_s6 = scalar_lea.hbm %s1705_s7, 32 }
 0x309   :  { %p1352_p5 = scmp.ne.s32.totalorder %s1705_s7, %s1351_s6  ;;  %p1355_p6 = scmp.lt.u32.totalorder %s1351_s6, %s1705_s7 }
 0x30b   :  { %p1357_p7 = pnand %p1355_p6, %p1352_p5 }
 0x30d   :  { %1360 = shalt.err (!%p1357_p7)
}
 0x30e   :  { %1009 = dma.vmem_to_hbm [thread:$0]  %s1007_s4, 32, %s1705_s7, [#allocation3]  }
 0x30f   :  { %1361 = dma.done.wait [#allocation3], 32  }
 0x310   :  { %1362 = vsyncadd [#allocation3], 4294967264 }
 0x311   :  { %1013 = vsyncpa [#allocation3], 1 }

// kernel: net_forward.3
= control target key start
LH: loop header
LB: loop body
LE: loop exit
PB: predicated region body
PF: predicated region fallthrough
CT: control target
= control target key end

     0   :  { %s2004_s12 = smov 0   ;;  %s2448_s0 = inlined_call_operand.vmem [shape: f32[2,36,108], index: 0, kind: input, shape index: {}]   ;;  %s2449_s1 = inlined_call_operand.vmem [shape: bf16[5,108,256], index: 1, kind: input, shape index: {}]   ;;  %s2450_s2 = inlined_call_operand.vmem [shape: f32[1,256], index: 2, kind: input, shape index: {}]   ;;  %s2451_s3 = inlined_call_operand.vmem [shape: f32[2,16,128], index: 3, kind: output, shape index: {}]  }
   0x1 LB: > { %s1620_s13 = sadd.s32 4294967295, %s1980_s12   ;;  %p1624_p0 = scmp.ge.s32.totalorder %s1980_s12, 1  ;;  %s1980_s12 = sphi %s2004_s12, %s13_s12  }
   0x2   : > { %p137_p1 = scmp.lt.s32.totalorder %s1980_s12, 3 }
   0x4   : > { %p138_p2 = pnand %p1624_p0, %p137_p1 }
   0x5   : > { %v1837_v0 = vld [vmem:[%s2449_s1 + $0x74] ss:$8 sps:$4 sm:$0xff] (!%p138_p2)   ;;  %v1839_v1 = vld [vmem:[%s2449_s1 + $0xe4] ss:$8 sps:$4 sm:$0xff] (!%p138_p2)   ;;  %v1982_v2 = vmov (!%p138_p2), 0   ;;  %p161_p3 = scmp.lt.s32.totalorder (!%p138_p2), %s1620_s13, 1 }
   0x6   : > { %141 = sbr.rel (%p138_p2) target bundleno = 424 (0x1a8), region = 32  ;;  %327 = vmatprep.mubr.bf16.mxu1 (!%p138_p2), %v1982_v2  ;;  %614 = vmatprep.mubr.bf16.mxu0 (!%p138_p2), %v1982_v2  ;;  %v1841_v3 = vld [vmem:[%s2449_s1 + $0x70] ss:$8 sps:$4 sm:$0xff] (!%p138_p2)   ;;  %v1842_v4 = vld [vmem:[%s2449_s1 + $0xe0] ss:$8 sps:$4 sm:$0xff] (!%p138_p2)   ;;  %vm288_vm0 = vcmask (!%p138_p2), 1045504  }
   0x7   : > { %295 = vmatprep.subr.bf16.mxu1 (!%p138_p2), %v1837_v0  ;;  %582 = vmatprep.subr.bf16.mxu0 (!%p138_p2), %v1839_v1  ;;  %v1843_v5 = vld [vmem:[%s2449_s1 + $0x84] ss:$8 sps:$4 sm:$0xff] (!%p138_p2)   ;;  %v1845_v6 = vld [vmem:[%s2449_s1 + $0xf4] ss:$8 sps:$4 sm:$0xff] (!%p138_p2)   ;;  %v1847_v7 = vld [vmem:[%s2449_s1 + $0x80] ss:$8 sps:$4 sm:$0xff] (!%p138_p2)  }
   0x8   : > { %296 = vmatpush1.bf16.msra.mxu1 (!%p138_p2), %v1841_v3  ;;  %583 = vmatpush1.bf16.msra.mxu0 (!%p138_p2), %v1842_v4  ;;  %v1848_v8 = vld [vmem:[%s2449_s1 + $0xf0] ss:$8 sps:$4 sm:$0xff] (!%p138_p2)   ;;  %v1849_v9 = vld [vmem:[%s2449_s1 + $0x94] ss:$8 sps:$4 sm:$0xff] (!%p138_p2)   ;;  %v1851_v10 = vld [vmem:[%s2449_s1 + $0x104] ss:$8 sps:$4 sm:$0xff] (!%p138_p2)  }
   0x9   : > { %297 = vmatprep.subr.bf16.mxu1 (!%p138_p2), %v1843_v5  ;;  %584 = vmatprep.subr.bf16.mxu0 (!%p138_p2), %v1845_v6  ;;  %v1853_v11 = vld [vmem:[%s2449_s1 + $0x90] ss:$8 sps:$4 sm:$0xff] (!%p138_p2)   ;;  %v1854_v12 = vld [vmem:[%s2449_s1 + $0x100] ss:$8 sps:$4 sm:$0xff] (!%p138_p2)   ;;  %v1855_v13 = vld [vmem:[%s2449_s1 + $0xa4] ss:$8 sps:$4 sm:$0xff] (!%p138_p2)  }
   0xa   : > { %v1857_v14 = vld [vmem:[%s2449_s1 + $0x114] ss:$8 sps:$4 sm:$0xff] (!%p138_p2)   ;;  %v1859_v15 = vld [vmem:[%s2449_s1 + $0xa0] ss:$8 sps:$4 sm:$0xff] (!%p138_p2)   ;;  %v1860_v16 = vld [vmem:[%s2449_s1 + $0x110] ss:$8 sps:$4 sm:$0xff] (!%p138_p2)  }
   0xb   : > { %v1861_v17 = vld [vmem:[%s2449_s1 + $0xb4] ss:$8 sps:$4 sm:$0xff] (!%p138_p2)   ;;  %v1863_v18 = vld [vmem:[%s2449_s1 + $0x124] ss:$8 sps:$4 sm:$0xff] (!%p138_p2)   ;;  %v1865_v19 = vld [vmem:[%s2449_s1 + $0xb0] ss:$8 sps:$4 sm:$0xff] (!%p138_p2)  }
   0xc   : > { %298 = vmatpush1.bf16.msra.mxu1 (!%p138_p2), %v1847_v7  ;;  %585 = vmatpush1.bf16.msra.mxu0 (!%p138_p2), %v1848_v8  ;;  %v1866_v20 = vld [vmem:[%s2449_s1 + $0x120] ss:$8 sps:$4 sm:$0xff] (!%p138_p2)   ;;  %v1867_v21 = vld [vmem:[%s2449_s1 + $0xc4] ss:$8 sps:$4 sm:$0xff] (!%p138_p2)   ;;  %v1869_v22 = vld [vmem:[%s2449_s1 + $0x134] ss:$8 sps:$4 sm:$0xff] (!%p138_p2)  }
   0xd   : > { %299 = vmatprep.subr.bf16.mxu1 %v1849_v9  ;;  %586 = vmatprep.subr.bf16.mxu0 %v1851_v10  ;;  %s2453_s13 = smov (!%p161_p3, %s1620_s13), 1  ;;  %v1871_v23 = vld [vmem:[%s2449_s1 + $0xc0] ss:$8 sps:$4 sm:$0xff]   ;;  %v1872_v24 = vld [vmem:[%s2449_s1 + $0x130] ss:$8 sps:$4 sm:$0xff]   ;;  %vm281_vm1 = vcmask 883712  }
   0xe   : > { %s1826_s29 = smul.u32 40, %s2453_s13  ;;  %v1873_v25 = vld [vmem:[%s2449_s1 + $0xd4] ss:$8 sps:$4 sm:$0x3f]   ;;  %v1881_v35 = vld [vmem:[%s2449_s1 + $0x4] ss:$8 sps:$4 sm:$0xff]  }
   0xf   : > { %v1877_v26 = vld [vmem:[%s2449_s1 + $0xd0] ss:$8 sps:$4 sm:$0x3f]   ;;  %v1875_v27 = vld [vmem:[%s2449_s1 + $0x144] ss:$8 sps:$4 sm:$0x3f]  }
  0x10   : > { %300 = vmatpush1.bf16.msra.mxu1 %v1853_v11  ;;  %587 = vmatpush1.bf16.msra.mxu0 %v1854_v12  ;;  %s2099_s17 = scalar_lea.vmem %s2448_s0, %s1826_s29  ;;  %v1878_v28 = vld [vmem:[%s2449_s1 + $0x140] ss:$8 sps:$4 sm:$0x3f]   ;;  %v290_v32 = vsel %vm288_vm0, %v1877_v26, 0  ;;  %v1884_v36 = vld [vmem:[%s2449_s1 + $0x154] ss:$8 sps:$4 sm:$0xff]  }
  0x11   : > { %301 = vmatprep.subr.bf16.mxu1 %v1855_v13  ;;  %588 = vmatprep.subr.bf16.mxu0 %v1857_v14  ;;  %v192_v29 = vld [vmem:[%s2099_s17 + $0x1] sm:$0xff]  ;;  %v193_v30 = vld [vmem:[%s2099_s17 + $0x9] sm:$0xff]  ;;  %v577_v34 = vsel %vm288_vm0, %v1878_v28, 0  ;;  %v1887_v41 = vld [vmem:[%s2449_s1 + $0x14] ss:$8 sps:$4 sm:$0xff]   ;;  %vm1283_vm2 = vcmask 1041408  }
  0x12   : > { %v481_v31 = vld [vmem:[%s2099_s17 + $0x2] sm:$0xff]  ;;  %v482_v33 = vld [vmem:[%s2099_s17 + $0xa] sm:$0xff]  ;;  %v196_v38 = vpack.c.bf16 %v193_v30, %v192_v29  ;;  %v1896_v46 = vld [vmem:[%s2449_s1 + $0x174] ss:$8 sps:$4 sm:$0xff]   ;;  %vm1540_vm3 = vcmask 1041409   ;;  %vm1542_vm4 = vcmask 1042434  }
  0x13   : > { %v1879_v37 = vld [vmem:[%s2449_s1] ss:$8 sps:$4 sm:$0xff]   ;;  %v485_v39 = vpack.c.bf16 %v482_v33, %v481_v31  ;;  %v1882_v40 = vld [vmem:[%s2449_s1 + $0x150] ss:$8 sps:$4 sm:$0xff]   ;;  %v1890_v42 = vld [vmem:[%s2449_s1 + $0x164] ss:$8 sps:$4 sm:$0xff]  }
  0x14   : > { %302 = vmatpush1.bf16.msra.mxu1 %v1859_v15  ;;  %589 = vmatpush1.bf16.msra.mxu0 %v1860_v16  ;;  %v1885_v43 = vld [vmem:[%s2449_s1 + $0x10] ss:$8 sps:$4 sm:$0xff]   ;;  %v1888_v44 = vld [vmem:[%s2449_s1 + $0x160] ss:$8 sps:$4 sm:$0xff]   ;;  %v1893_v45 = vld [vmem:[%s2449_s1 + $0x24] ss:$8 sps:$4 sm:$0xff]  }
  0x15   : > { %303 = vmatprep.subr.bf16.mxu1 %v1861_v17  ;;  %590 = vmatprep.subr.bf16.mxu0 %v1863_v18  ;;  %v194_v47 = vld [vmem:[%s2099_s17 + $0x11] sm:$0xff]  ;;  %v195_v48 = vld [vmem:[%s2099_s17 + $0x19] sm:$0xff]  ;;  %v1902_v55 = vld [vmem:[%s2449_s1 + $0x184] ss:$8 sps:$4 sm:$0xff]   ;;  %vm1544_vm5 = vcmask 1043459   ;;  %vm1546_vm6 = vcmask 1044484  }
  0x16   : > { %v1891_v49 = vld [vmem:[%s2449_s1 + $0x20] ss:$8 sps:$4 sm:$0xff]   ;;  %v1894_v50 = vld [vmem:[%s2449_s1 + $0x170] ss:$8 sps:$4 sm:$0xff]   ;;  %v197_v51 = vpack.c.bf16 %v195_v48, %v194_v47  ;;  %v1899_v54 = vld [vmem:[%s2449_s1 + $0x34] ss:$8 sps:$4 sm:$0xff]  }
  0x17   : > { %v483_v52 = vld [vmem:[%s2099_s17 + $0x12] sm:$0xff]  ;;  %v484_v53 = vld [vmem:[%s2099_s17 + $0x1a] sm:$0xff]  ;;  %v1905_v59 = vld [vmem:[%s2449_s1 + $0x44] ss:$8 sps:$4 sm:$0xff]   ;;  %vm1548_vm7 = vcmask 1045509   ;;  %vm1550_vm8 = vcmask 1046534  }
  0x18   : > { %304 = vmatpush1.bf16.msra.mxu1 %v1865_v19  ;;  %591 = vmatpush1.bf16.msra.mxu0 %v1866_v20  ;;  %v486_v56 = vpack.c.bf16 %v484_v53, %v483_v52  ;;  %v1897_v57 = vld [vmem:[%s2449_s1 + $0x30] ss:$8 sps:$4 sm:$0xff]   ;;  %v1900_v58 = vld [vmem:[%s2449_s1 + $0x180] ss:$8 sps:$4 sm:$0xff]   ;;  %v1908_v60 = vld [vmem:[%s2449_s1 + $0x194] ss:$8 sps:$4 sm:$0xff]  }
  0x19   : > { %305 = vmatprep.subr.bf16.mxu1 %v1867_v21  ;;  %592 = vmatprep.subr.bf16.mxu0 %v1869_v22  ;;  %v1903_v61 = vld [vmem:[%s2449_s1 + $0x40] ss:$8 sps:$4 sm:$0xff]   ;;  %v1906_v62 = vld [vmem:[%s2449_s1 + $0x190] ss:$8 sps:$4 sm:$0xff]   ;;  %v1911_v63 = vld [vmem:[%s2449_s1 + $0x54] ss:$8 sps:$4 sm:$0xff]  }
  0x1a   : > { %v1914_v0 = vld [vmem:[%s2449_s1 + $0x1a4] ss:$8 sps:$4 sm:$0xff]   ;;  %v1909_v1 = vld [vmem:[%s2449_s1 + $0x50] ss:$8 sps:$4 sm:$0xff]   ;;  %v1912_v5 = vld [vmem:[%s2449_s1 + $0x1a0] ss:$8 sps:$4 sm:$0xff]  }
  0x1b   : > { %v1915_v3 = vld [vmem:[%s2449_s1 + $0x64] ss:$8 sps:$4 sm:$0x3f]   ;;  %v1917_v4 = vld [vmem:[%s2449_s1 + $0x1b4] ss:$8 sps:$4 sm:$0x3f]  }
  0x1c   : > { %306 = vmatpush1.bf16.msra.mxu1 %v1871_v23  ;;  %593 = vmatpush1.bf16.msra.mxu0 %v1872_v24  ;;  %v1919_v6 = vld [vmem:[%s2449_s1 + $0x60] ss:$8 sps:$4 sm:$0x3f]   ;;  %v1920_v7 = vld [vmem:[%s2449_s1 + $0x1b0] ss:$8 sps:$4 sm:$0x3f]  }
  0x1d   : > { %1656 = vmatprep.subr.msk.bf16.mxu1 %vm288_vm0, %v1873_v25  ;;  %1704 = vmatprep.subr.msk.bf16.mxu0 %vm288_vm0, %v1875_v27  ;;  %v172_v8 = vld [vmem:[%s2099_s17] sm:$0xff]  ;;  %v173_v9 = vld [vmem:[%s2099_s17 + $0x8] sm:$0xff]  ;;  %v423_v12 = vsel %vm288_vm0, %v1919_v6, 0  ;;  %v739_v13 = vsel %vm288_vm0, %v1920_v7, 0  ;;  %v1926_v18 = vld [vmem:[%s2449_s1 + $0x1d4] ss:$8 sps:$4 sm:$0xff]  }
  0x1e   : > { %v643_v10 = vld [vmem:[%s2099_s17 + $0x3] sm:$0xff]  ;;  %v644_v11 = vld [vmem:[%s2099_s17 + $0xb] sm:$0xff]  ;;  %v176_v15 = vpack.c.bf16 %v173_v9, %v172_v8  ;;  %v175_v21 = vld [vmem:[%s2099_s17 + $0x18] sm:$0xff]  ;;  %vm1552_vm9 = vcmask 1047559   ;;  %s1779_s10 = sshll.u32 %s2453_s13, 4 }
  0x1f   : > { %v1923_v14 = vld [vmem:[%s2449_s1 + $0x1c4] ss:$8 sps:$4 sm:$0xff]   ;;  %v647_v16 = vpack.c.bf16 %v644_v11, %v643_v10  ;;  %v1921_v17 = vld [vmem:[%s2449_s1 + $0x1c0] ss:$8 sps:$4 sm:$0xff]   ;;  %v1924_v19 = vld [vmem:[%s2449_s1 + $0x1d0] ss:$8 sps:$4 sm:$0xff]   ;;  %s2430_s14 = scalar_lea.vmem %s2451_s3, %s1779_s10 }
  0x20   : > { %308 = vmatpush1.bf16.msra.mxu1 %v290_v32  ;;  %595 = vmatpush1.bf16.msra.mxu0 %v577_v34  ;;  %v174_v20 = vld [vmem:[%s2099_s17 + $0x10] sm:$0xff]  ;;  %v646_v23 = vld [vmem:[%s2099_s17 + $0x1b] sm:$0xff]  ;;  %v1929_v24 = vld [vmem:[%s2449_s1 + $0x1e4] ss:$8 sps:$4 sm:$0xff]  }
  0x21   : > { %428 = vmatprep.subr.bf16.mxu1 %v1881_v35  ;;  %744 = vmatprep.subr.bf16.mxu0 %v1884_v36  ;;  %v645_v22 = vld [vmem:[%s2099_s17 + $0x13] sm:$0xff]  ;;  %v177_v25 = vpack.c.bf16 %v175_v21, %v174_v20  ;;  %v1927_v27 = vld [vmem:[%s2449_s1 + $0x1e0] ss:$8 sps:$4 sm:$0xff]   ;;  %v1935_v30 = vld [vmem:[%s2449_s1 + $0x204] ss:$8 sps:$4 sm:$0xff]  }
  0x22   : > { %v648_v26 = vpack.c.bf16 %v646_v23, %v645_v22  ;;  %v1932_v28 = vld [vmem:[%s2449_s1 + $0x1f4] ss:$8 sps:$4 sm:$0xff]   ;;  %v1930_v29 = vld [vmem:[%s2449_s1 + $0x1f0] ss:$8 sps:$4 sm:$0xff]   ;;  %v1933_v31 = vld [vmem:[%s2449_s1 + $0x200] ss:$8 sps:$4 sm:$0xff]  }
  0x23   : > { %1657 = vmatmul.mubr.msk.bf16.vlgmr.msra.gmra.mrb[0].mxu1 %vm281_vm1, %v196_v38  ;;  %1705 = vmatmul.mubr.msk.bf16.vlgmr.msra.gmra.mrb[0].mxu0 %vm281_vm1, %v485_v39  ;;  %v1938_v32 = vld [vmem:[%s2449_s1 + $0x214] ss:$8 sps:$4 sm:$0xff]   ;;  %v1939_v33 = vld [vmem:[%s2449_s1 + $0x224] ss:$8 sps:$4 sm:$0x3f]  }
  0x24   : > { %429 = vmatpush1.bf16.msra.mxu1 %v1879_v37  ;;  %745 = vmatpush1.bf16.msra.mxu0 %v1882_v40  ;;  %v1941_v34 = vld [vmem:[%s2449_s1 + $0x220] ss:$8 sps:$4 sm:$0x3f]   ;;  %v806_v36 = vld [vmem:[%s2099_s17 + $0xc] sm:$0xff]  ;;  %v807_v37 = vld [vmem:[%s2099_s17 + $0x14] sm:$0xff] }
  0x25   : > { %430 = vmatprep.subr.bf16.mxu1 %v1887_v41  ;;  %746 = vmatprep.subr.bf16.mxu0 %v1890_v42  ;;  %v805_v35 = vld [vmem:[%s2099_s17 + $0x4] sm:$0xff]  ;;  %v808_v38 = vld [vmem:[%s2099_s17 + $0x1c] sm:$0xff]  ;;  %v901_v39 = vsel %vm288_vm0, %v1941_v34, 0 }
  0x26   : > { %337 = vmatprep.mubr.bf16.mxu1 %v1982_v2  ;;  %624 = vmatprep.mubr.bf16.mxu0 %v1982_v2  ;;  %v809_v40 = vpack.c.bf16 %v806_v36, %v805_v35  ;;  %v810_v41 = vpack.c.bf16 %v808_v38, %v807_v37 }
  0x28   : > { %431 = vmatpush1.bf16.msra.mxu1 %v1885_v43  ;;  %747 = vmatpush1.bf16.msra.mxu0 %v1888_v44 }
  0x29   : > { %432 = vmatprep.subr.bf16.mxu1 %v1893_v45  ;;  %748 = vmatprep.subr.bf16.mxu0 %v1896_v46 }
  0x2b   : > { %1658 = vmatmul.mubr.msk.bf16.gmra.mrb[4].mxu1 %vm281_vm1, %v197_v51  ;;  %1706 = vmatmul.mubr.msk.bf16.gmra.mrb[4].mxu0 %vm281_vm1, %v486_v56 }
  0x2c   : > { %433 = vmatpush1.bf16.msra.mxu1 %v1891_v49  ;;  %749 = vmatpush1.bf16.msra.mxu0 %v1894_v50 }
  0x2d   : > { %434 = vmatprep.subr.bf16.mxu1 %v1899_v54  ;;  %750 = vmatprep.subr.bf16.mxu0 %v1902_v55 }
  0x2e   : > { %460 = vmatprep.mubr.bf16.mxu1 %v1982_v2  ;;  %776 = vmatprep.mubr.bf16.mxu0 %v1982_v2 }
  0x30   : > { %435 = vmatpush1.bf16.msra.mxu1 %v1897_v57  ;;  %751 = vmatpush1.bf16.msra.mxu0 %v1900_v58  ;;  %v969_v58 = vlaneseq }
  0x31   : > { %436 = vmatprep.subr.bf16.mxu1 %v1905_v59  ;;  %752 = vmatprep.subr.bf16.mxu0 %v1908_v60 }
  0x32   : > { %v2285_v59 = vshrl.u32 %v969_v58, 7 }
  0x34   : > { %437 = vmatpush1.bf16.msra.mxu1 %v1903_v61  ;;  %753 = vmatpush1.bf16.msra.mxu0 %v1906_v62  ;;  %v971_v60 = vsub.s32 0, %v2285_v59  ;;  %v967_v61 = vld [vmem:[%s2450_s2] sm:$0x3]  ;;  %v975_v62 = vsub.s32 1, %v2285_v59 }
  0x35   : > { %438 = vmatprep.subr.bf16.mxu1 %v1911_v63  ;;  %754 = vmatprep.subr.bf16.mxu0 %v1914_v0 }
  0x36   : > { %v972_v63 = vrot.slane %v967_v61, %v971_v60 }
  0x38   : > { %439 = vmatpush1.bf16.msra.mxu1 %v1909_v1  ;;  %755 = vmatpush1.bf16.msra.mxu0 %v1912_v5 }
  0x39   : > { %1673 = vmatprep.subr.msk.bf16.mxu1 %vm288_vm0, %v1915_v3  ;;  %1735 = vmatprep.subr.msk.bf16.mxu0 %vm288_vm0, %v1917_v4  ;;  %v976_v3 = vrot.slane %v967_v61, %v975_v62 }
  0x3c   : > { %441 = vmatpush1.bf16.msra.mxu1 %v423_v12  ;;  %757 = vmatpush1.bf16.msra.mxu0 %v739_v13 }
  0x3d   : > { %906 = vmatprep.subr.bf16.mxu0 %v1923_v14  ;;  %1780 = vmatprep.subr.bf16.mxu1 %v1923_v14 }
  0x3f   : > { %1674 = vmatmul.mubr.msk.bf16.vlgmr.msra.gmra.mrb[0].mxu1 %vm281_vm1, %v176_v15  ;;  %1736 = vmatmul.mubr.msk.bf16.vlgmr.msra.gmra.mrb[0].mxu0 %vm281_vm1, %v647_v16 }
  0x40   : > { %907 = vmatpush1.bf16.msra.mxu0 %v1921_v17  ;;  %1787 = vmatpush1.bf16.msra.mxu1 %v1921_v17 }
  0x41   : > { %908 = vmatprep.subr.bf16.mxu0 %v1926_v18  ;;  %1781 = vmatprep.subr.bf16.mxu1 %v1926_v18 }
  0x42   : > { %470 = vmatprep.mubr.bf16.mxu1 %v1982_v2  ;;  %786 = vmatprep.mubr.bf16.mxu0 %v1982_v2 }
  0x44   : > { %909 = vmatpush1.bf16.msra.mxu0 %v1924_v19  ;;  %1788 = vmatpush1.bf16.msra.mxu1 %v1924_v19 }
  0x45   : > { %910 = vmatprep.subr.bf16.mxu0 %v1929_v24  ;;  %1782 = vmatprep.subr.bf16.mxu1 %v1929_v24 }
  0x47   : > { %1675 = vmatmul.mubr.msk.bf16.gmra.mrb[4].mxu1 %vm281_vm1, %v177_v25  ;;  %1737 = vmatmul.mubr.msk.bf16.gmra.mrb[4].mxu0 %vm281_vm1, %v648_v26 }
  0x48   : > { %911 = vmatpush1.bf16.msra.mxu0 %v1927_v27  ;;  %1789 = vmatpush1.bf16.msra.mxu1 %v1927_v27 }
  0x49   : > { %912 = vmatprep.subr.bf16.mxu0 %v1932_v28  ;;  %1783 = vmatprep.subr.bf16.mxu1 %v1932_v28 }
  0x4a   : > { %938 = vmatprep.mubr.bf16.mxu0 %v1982_v2  ;;  %948 = vmatprep.mubr.bf16.mxu1 %v1982_v2  ;;  %v1936_v2 = vld [vmem:[%s2449_s1 + $0x210] ss:$8 sps:$4 sm:$0xff]  }
  0x4c   : > { %913 = vmatpush1.bf16.msra.mxu0 %v1930_v29  ;;  %1790 = vmatpush1.bf16.msra.mxu1 %v1930_v29 }
  0x4d   : > { %914 = vmatprep.subr.bf16.mxu0 %v1935_v30  ;;  %1784 = vmatprep.subr.bf16.mxu1 %v1935_v30 }
  0x50   : > { %915 = vmatpush1.bf16.msra.mxu0 %v1933_v31  ;;  %1791 = vmatpush1.bf16.msra.mxu1 %v1933_v31 }
  0x51   : > { %916 = vmatprep.subr.bf16.mxu0 %v1938_v32  ;;  %1785 = vmatprep.subr.bf16.mxu1 %v1938_v32 }
  0x54   : > { %917 = vmatpush1.bf16.msra.mxu0 %v1936_v2  ;;  %1792 = vmatpush1.bf16.msra.mxu1 %v1936_v2 }
  0x55   : > { %1766 = vmatprep.subr.msk.bf16.mxu0 %vm288_vm0, %v1939_v33  ;;  %1786 = vmatprep.subr.msk.bf16.mxu1 %vm288_vm0, %v1939_v33 }
  0x58   : > { %919 = vmatpush1.bf16.msra.mxu0 %v901_v39  ;;  %1793 = vmatpush1.bf16.msra.mxu1 %v901_v39 }
  0x5b   : > { %1767 = vmatmul.mubr.msk.bf16.vlgmr.msra.gmra.mrb[0].mxu0 %vm281_vm1, %v809_v40  ;;  %1768 = vmatmul.mubr.msk.bf16.vlgmr.msra.gmra.mrb[8].mxu1 %vm281_vm1, %v810_v41 }
 0x112   : > { %v462_v42 = vpop.f32.mrb[0].mxu1 }
 0x113   : > { %v464_v43 = vpop.f32.mrb[1].mxu1 }
 0x114   : > { %v466_v44 = vpop.f32.mrb[2].mxu1 }
 0x115   : > { %v468_v45 = vpop.f32.mrb[3].mxu1 }
 0x11a   : > { %v472_v46 = vpop.f32.mrb[4].mxu1  ;;  %v788_v47 = vpop.f32.mrb[4].mxu0 }
 0x11b   : > { %v1798_v48 = vadd.f32 %v788_v47, %v472_v46  ;;  %v474_v49 = vpop.f32.mrb[5].mxu1  ;;  %v790_v50 = vpop.f32.mrb[5].mxu0 }
 0x11c   : > { %v1800_v51 = vadd.f32 %v790_v50, %v474_v49  ;;  %v476_v52 = vpop.f32.mrb[6].mxu1  ;;  %v792_v53 = vpop.f32.mrb[6].mxu0 }
 0x11d   : > { %v1802_v54 = vadd.f32 %v792_v53, %v476_v52  ;;  %v478_v55 = vpop.f32.mrb[7].mxu1  ;;  %v794_v56 = vpop.f32.mrb[7].mxu0 }
 0x11e   : > { %v1804_v57 = vadd.f32 %v794_v56, %v478_v55 }
 0x12e   : > { %v940_v0 = vpop.f32.mrb[0].mxu0  ;;  %v950_v1 = vpop.f32.mrb[8].mxu1 }
 0x12f   : > { %v1794_v4 = vadd.f32 %v940_v0, %v462_v42  ;;  %v1799_v5 = vadd.f32 %v1798_v48, %v950_v1  ;;  %v942_v6 = vpop.f32.mrb[1].mxu0  ;;  %v952_v7 = vpop.f32.mrb[9].mxu1  ;;  %v1983_v48 = vmov 1983009808  }
 0x130   : > { %v1795_v8 = vadd.f32 %v942_v6, %v464_v43  ;;  %v1801_v9 = vadd.f32 %v1800_v51, %v952_v7  ;;  %v944_v10 = vpop.f32.mrb[2].mxu0  ;;  %v954_v11 = vpop.f32.mrb[10].mxu1  ;;  %v1054_v49 = vunpack.c.l.s4 %v1983_v48 }
 0x131   : > { %v979_v12 = vadd.f32 %v1794_v4, %v972_v63  ;;  %v983_v13 = vadd.f32 %v1799_v5, %v972_v63  ;;  %v1796_v14 = vadd.f32 %v944_v10, %v466_v44  ;;  %v1803_v15 = vadd.f32 %v1802_v54, %v954_v11  ;;  %v946_v16 = vpop.f32.mrb[3].mxu0  ;;  %v956_v17 = vpop.f32.mrb[11].mxu1 }
 0x132   : > { %v980_v18 = vadd.f32 %v1795_v8, %v976_v3  ;;  %v984_v19 = vadd.f32 %v1801_v9, %v976_v3  ;;  %v1797_v20 = vadd.f32 %v946_v16, %v468_v45  ;;  %v1805_v21 = vadd.f32 %v1804_v57, %v956_v17 }
 0x133   : > { %v1769_v22 = vmul.f32 -1.442695, %v979_v12  ;;  %v1773_v23 = vmul.f32 -1.442695, %v983_v13  ;;  %v2292_v24 = vadd.f32 %v1796_v14, %v972_v63  ;;  %v2294_v25 = vadd.f32 %v1803_v15, %v972_v63 }
 0x134   : > { %v1770_v26 = vmul.f32 -1.442695, %v980_v18  ;;  %v1774_v27 = vmul.f32 -1.442695, %v984_v19  ;;  %v2296_v28 = vadd.f32 %v1797_v20, %v976_v3  ;;  %v2298_v29 = vadd.f32 %v1805_v21, %v976_v3 }
 0x135   : > { %1942 = vpow2.f32 %v1769_v22  ;;  %v1771_v30 = vmul.f32 -1.442695, %v2292_v24  ;;  %v1775_v31 = vmul.f32 -1.442695, %v2294_v25  ;;  %v1055_v51 = vunpack.c.0.s8 %v1054_v49 }
 0x136   : > { %1944 = vpow2.f32 %v1773_v23  ;;  %v1772_v32 = vmul.f32 -1.442695, %v2296_v28  ;;  %v1776_v2 = vmul.f32 -1.442695, %v2298_v29 }
 0x137   : > { %1946 = vpow2.f32 %v1770_v26  ;;  %v2305_v58 = vsub.s32 %v1055_v51, %v2285_v59 }
 0x138   : > { %1948 = vpow2.f32 %v1774_v27 }
 0x139   : > { %1950 = vpow2.f32 %v1771_v30 }
 0x13a   : > { %1952 = vpow2.f32 %v1775_v31 }
 0x13b   : > { %1954 = vpow2.f32 %v1772_v32 }
 0x13c   : > { %1956 = vpow2.f32 %v1776_v2 }
 0x13f   : > { %v1943_v33 = vpop.eup %1942 }
 0x140   : > { %v1945_v34 = vpop.eup %1944  ;;  %v1011_v35 = vadd.f32 1.0, %v1943_v33 }
 0x141   : > { %v1947_v36 = vpop.eup %1946  ;;  %v1015_v37 = vadd.f32 1.0, %v1945_v34 }
 0x142   : > { %v1949_v38 = vpop.eup %1948  ;;  %1958 = vrcp.f32 %v1011_v35  ;;  %v1012_v39 = vadd.f32 1.0, %v1947_v36 }
 0x143   : > { %v1951_v40 = vpop.eup %1950  ;;  %1960 = vrcp.f32 %v1015_v37  ;;  %v1016_v41 = vadd.f32 1.0, %v1949_v38 }
 0x144   : > { %v1953_v42 = vpop.eup %1952  ;;  %1962 = vrcp.f32 %v1012_v39  ;;  %v1013_v43 = vadd.f32 1.0, %v1951_v40 }
 0x145   : > { %v1955_v44 = vpop.eup %1954  ;;  %1964 = vrcp.f32 %v1016_v41  ;;  %v1017_v45 = vadd.f32 1.0, %v1953_v42 }
 0x146   : > { %v1957_v46 = vpop.eup %1956  ;;  %1966 = vrcp.f32 %v1013_v43  ;;  %v1014_v47 = vadd.f32 1.0, %v1955_v44 }
 0x147   : > { %1968 = vrcp.f32 %v1017_v45  ;;  %v1018_v50 = vadd.f32 1.0, %v1957_v46 }
 0x148   : > { %1970 = vrcp.f32 %v1014_v47 }
 0x149   : > { %1972 = vrcp.f32 %v1018_v50 }
 0x14c   : > { %v1959_v52 = vpop.eup %1958 }
 0x14d   : > { %v1961_v53 = vpop.eup %1960  ;;  %v1035_v54 = vmul.f32 %v1959_v52, %v979_v12 }
 0x14e   : > { %v1963_v55 = vpop.eup %1962  ;;  %v1039_v56 = vmul.f32 %v1961_v53, %v983_v13 }
 0x14f   : > { %v1965_v57 = vpop.eup %1964  ;;  %v1036_v60 = vmul.f32 %v1963_v55, %v980_v18 }
 0x150   : > { %v1967_v61 = vpop.eup %1966  ;;  %v1040_v62 = vmul.f32 %v1965_v57, %v984_v19 }
 0x151   : > { %v1969_v63 = vpop.eup %1968  ;;  %v1051_v0 = vcombine.low %v1035_v54, %v1036_v60  ;;  %v1052_v1 = vcombine.high %v1035_v54, %v1036_v60  ;;  %v2310_v9 = vmul.f32 %v1967_v61, %v2292_v24 }
 0x152   : > { %v1971_v3 = vpop.eup %1970  ;;  %v1087_v4 = vcombine.low %v1039_v56, %v1040_v62  ;;  %v1088_v5 = vcombine.high %v1039_v56, %v1040_v62  ;;  %v2313_v59 = vmul.f32 %v1969_v63, %v2294_v25 }
 0x153   : > { %v1973_v6 = vpop.eup %1972  ;;  %v1059_v7 = vrot.slane %v1051_v0, %v2305_v58  ;;  %v1066_v8 = vrot.slane %v1052_v1, %v2305_v58  ;;  %v2320_v12 = vmul.f32 %v1971_v3, %v2296_v28 }
 0x154   : > { %v1095_v10 = vrot.slane %v1087_v4, %v2305_v58  ;;  %v2317_v11 = vrot.slane %v1088_v5, %v2305_v58  ;;  %v2323_v13 = vmul.f32 %v1973_v6, %v2298_v29 }
 0x155   : > { %v1067_v14 = vcombine.high %v1059_v7, %v1059_v7  ;;  %v1068_v15 = vcombine.high %v1066_v8, %v1066_v8  ;;  %v1129_v16 = vrot.slane %v1059_v7, %v2305_v58  ;;  %v1145_v17 = vrot.slane %v1066_v8, %v2305_v58 }
 0x156   : > { %v1103_v18 = vcombine.high %v1095_v10, %v1095_v10  ;;  %v1104_v19 = vcombine.high %v2317_v11, %v2317_v11  ;;  %v2330_v20 = vrot.slane %v1095_v10, %v2305_v58  ;;  %v2334_v21 = vrot.slane %v2317_v11, %v2305_v58 }
 0x157   : > { %v1130_v22 = vcombine.high %v1129_v16, %v1129_v16  ;;  %v1137_v23 = vrot.slane %v1067_v14, %v2305_v58  ;;  %v1146_v24 = vcombine.high %v1145_v17, %v1145_v17  ;;  %v1153_v25 = vrot.slane %v1068_v15, %v2305_v58 }
 0x158   : > { %v1284_v26 = vsel %vm1283_vm2, %v1129_v16, -inf  ;;  %v1312_v27 = vsel %vm1283_vm2, %v1145_v17, -inf  ;;  %v1194_v28 = vcombine.high %v2330_v20, %v2330_v20  ;;  %v2343_v29 = vrot.slane %v1103_v18, %v2305_v58 }
 0x159   : > { %v1138_v30 = vcombine.high %v1137_v23, %v1137_v23  ;;  %v1154_v31 = vcombine.high %v1153_v25, %v1153_v25  ;;  %v1285_v32 = vrot.slane %v1284_v26, 4  ;;  %v1291_v2 = vsel %vm1283_vm2, %v1130_v22, -inf }
 0x15a   : > { %v1292_v33 = vrot.slane %v1291_v2, 4  ;;  %v1298_v34 = vsel %vm1283_vm2, %v1137_v23, -inf  ;;  %v1313_v35 = vrot.slane %v1312_v27, 4  ;;  %v1319_v36 = vsel %vm1283_vm2, %v1146_v24, -inf }
 0x15b   : > { %v1286_v37 = vmax.f32 %v1284_v26, %v1285_v32  ;;  %v1299_v38 = vrot.slane %v1298_v34, 4  ;;  %v1305_v39 = vsel %vm1283_vm2, %v1138_v30, -inf  ;;  %v1320_v40 = vrot.slane %v1319_v36, 4 }
 0x15c   : > { %v1293_v41 = vmax.f32 %v1291_v2, %v1292_v33  ;;  %v1306_v42 = vrot.slane %v1305_v39, 4  ;;  %v1314_v43 = vmax.f32 %v1312_v27, %v1313_v35  ;;  %v1326_v44 = vsel %vm1283_vm2, %v1153_v25, -inf }
 0x15d   : > { %v1287_v45 = vrot.slane %v1286_v37, 2  ;;  %v1300_v46 = vmax.f32 %v1298_v34, %v1299_v38  ;;  %v1321_v47 = vmax.f32 %v1319_v36, %v1320_v40  ;;  %v1327_v48 = vrot.slane %v1326_v44, 4 }
 0x15e   : > { %v1294_v49 = vrot.slane %v1293_v41, 2  ;;  %v1307_v50 = vmax.f32 %v1305_v39, %v1306_v42  ;;  %v1315_v51 = vrot.slane %v1314_v43, 2  ;;  %v1333_v52 = vsel %vm1283_vm2, %v1154_v31, -inf }
 0x15f   : > { %v1288_v53 = vmax.f32 %v1286_v37, %v1287_v45  ;;  %v1301_v54 = vrot.slane %v1300_v46, 2  ;;  %v1322_v55 = vrot.slane %v1321_v47, 2  ;;  %v1328_v56 = vmax.f32 %v1326_v44, %v1327_v48 }
 0x160   : > { %v1295_v57 = vmax.f32 %v1293_v41, %v1294_v49  ;;  %v1308_v60 = vrot.slane %v1307_v50, 2  ;;  %v1316_v61 = vmax.f32 %v1314_v43, %v1315_v51  ;;  %v1334_v62 = vrot.slane %v1333_v52, 4 }
 0x161   : > { %v1289_v63 = vrot.slane %v1288_v53, 1  ;;  %v1302_v0 = vmax.f32 %v1300_v46, %v1301_v54  ;;  %v1323_v1 = vmax.f32 %v1321_v47, %v1322_v55  ;;  %v1329_v3 = vrot.slane %v1328_v56, 2 }
 0x162   : > { %v1296_v4 = vrot.slane %v1295_v57, 1  ;;  %v1309_v5 = vmax.f32 %v1307_v50, %v1308_v60  ;;  %v1317_v6 = vrot.slane %v1316_v61, 1  ;;  %v1335_v7 = vmax.f32 %v1333_v52, %v1334_v62 }
 0x163   : > { %v1290_v8 = vmax.f32 %v1288_v53, %v1289_v63  ;;  %v1303_v10 = vrot.slane %v1302_v0, 1  ;;  %v1324_v14 = vrot.slane %v1323_v1, 1  ;;  %v1330_v15 = vmax.f32 %v1328_v56, %v1329_v3 }
 0x164   : > { %v1297_v16 = vmax.f32 %v1295_v57, %v1296_v4  ;;  %v1310_v17 = vrot.slane %v1309_v5, 1  ;;  %v1318_v18 = vmax.f32 %v1316_v61, %v1317_v6  ;;  %v1336_v22 = vrot.slane %v1335_v7, 2 }
 0x165   : > { %v1304_v23 = vmax.f32 %v1302_v0, %v1303_v10  ;;  %v1325_v24 = vmax.f32 %v1323_v1, %v1324_v14  ;;  %v1331_v25 = vrot.slane %v1330_v15, 1  ;;  %v1202_v26 = vcombine.high %v2343_v29, %v2343_v29 }
 0x166   : > { %v1311_v27 = vmax.f32 %v1309_v5, %v1310_v17  ;;  %v1337_v30 = vmax.f32 %v1335_v7, %v1336_v22  ;;  %v1508_v31 = vmax.f32 %v1290_v8, %v1297_v16  ;;  %v1210_v32 = vcombine.high %v2334_v21, %v2334_v21 }
 0x167   : > { %v1332_v2 = vmax.f32 %v1330_v15, %v1331_v25  ;;  %v1510_v33 = vmax.f32 %v1318_v18, %v1325_v24  ;;  %v1217_v34 = vrot.slane %v1104_v19, %v2305_v58  ;;  %v1396_v35 = vsel %vm1283_vm2, %v2330_v20, -inf }
 0x168   : > { %v1338_v36 = vrot.slane %v1337_v30, 1  ;;  %v1509_v37 = vmax.f32 %v1304_v23, %v1311_v27  ;;  %v1397_v38 = vrot.slane %v1396_v35, 4  ;;  %v1403_v39 = vsel %vm1283_vm2, %v1194_v28, -inf }
 0x169   : > { %v1218_v40 = vcombine.high %v1217_v34, %v1217_v34  ;;  %v1404_v41 = vrot.slane %v1403_v39, 4  ;;  %v1410_v42 = vsel %vm1283_vm2, %v2343_v29, -inf  ;;  %v1417_v43 = vsel %vm1283_vm2, %v1202_v26, -inf }
 0x16a   : > { %v1339_v11 = vmax.f32 %v1337_v30, %v1338_v36  ;;  %v1541_v19 = vsel %vm1540_vm3, %v1509_v37, %v1508_v31  ;;  %v1398_v44 = vmax.f32 %v1396_v35, %v1397_v38  ;;  %v1411_v45 = vrot.slane %v1410_v42, 4 }
 0x16b   : > { %v1543_v46 = vsel %vm1542_vm4, %v1510_v33, %v1541_v19  ;;  %v1405_v47 = vmax.f32 %v1403_v39, %v1404_v41  ;;  %v1418_v48 = vrot.slane %v1417_v43, 4  ;;  %v1424_v20 = vsel %vm1283_vm2, %v2334_v21, -inf }
 0x16c   : > { %v1511_v28 = vmax.f32 %v1332_v2, %v1339_v11  ;;  %v1399_v49 = vrot.slane %v1398_v44, 2  ;;  %v1412_v50 = vmax.f32 %v1410_v42, %v1411_v45  ;;  %v1425_v51 = vrot.slane %v1424_v20, 4 }
 0x16d   : > { %v1406_v52 = vrot.slane %v1405_v47, 2  ;;  %v1419_v29 = vmax.f32 %v1417_v43, %v1418_v48  ;;  %v1431_v53 = vsel %vm1283_vm2, %v1210_v32, -inf  ;;  %v1438_v54 = vsel %vm1283_vm2, %v1217_v34, -inf }
 0x16e   : > { %v2375_v55 = vsel %vm1544_vm5, %v1511_v28, %v1543_v46  ;;  %v1400_v56 = vmax.f32 %v1398_v44, %v1399_v49  ;;  %v1413_v57 = vrot.slane %v1412_v50, 2  ;;  %v1426_v60 = vmax.f32 %v1424_v20, %v1425_v51 }
 0x16f   : > { %v1407_v61 = vmax.f32 %v1405_v47, %v1406_v52  ;;  %v1420_v62 = vrot.slane %v1419_v29, 2  ;;  %v1432_v63 = vrot.slane %v1431_v53, 4  ;;  %v1439_v21 = vrot.slane %v1438_v54, 4 }
 0x170   : > { %v1401_v0 = vrot.slane %v1400_v56, 1  ;;  %v1414_v1 = vmax.f32 %v1412_v50, %v1413_v57  ;;  %v1427_v3 = vrot.slane %v1426_v60, 2  ;;  %v1445_v4 = vsel %vm1283_vm2, %v1218_v40, -inf }
 0x171   : > { %v1408_v5 = vrot.slane %v1407_v61, 1  ;;  %v1421_v6 = vmax.f32 %v1419_v29, %v1420_v62  ;;  %v1433_v7 = vmax.f32 %v1431_v53, %v1432_v63  ;;  %v1440_v8 = vmax.f32 %v1438_v54, %v1439_v21 }
 0x172   : > { %v1402_v10 = vmax.f32 %v1400_v56, %v1401_v0  ;;  %v1415_v14 = vrot.slane %v1414_v1, 1  ;;  %v1428_v15 = vmax.f32 %v1426_v60, %v1427_v3  ;;  %v1446_v16 = vrot.slane %v1445_v4, 4 }
 0x173   : > { %v1409_v17 = vmax.f32 %v1407_v61, %v1408_v5  ;;  %v1422_v18 = vrot.slane %v1421_v6, 1  ;;  %v1434_v22 = vrot.slane %v1433_v7, 2  ;;  %v1441_v23 = vrot.slane %v1440_v8, 2 }
 0x174   : > { %v1416_v24 = vmax.f32 %v1414_v1, %v1415_v14  ;;  %v1429_v25 = vrot.slane %v1428_v15, 1  ;;  %v1447_v26 = vmax.f32 %v1445_v4, %v1446_v16  ;;  %v1069_v27 = vcombine.low %v2310_v9, %v2320_v12 }
 0x175   : > { %v1423_v30 = vmax.f32 %v1421_v6, %v1422_v18  ;;  %v1435_v31 = vmax.f32 %v1433_v7, %v1434_v22  ;;  %v1442_v32 = vmax.f32 %v1440_v8, %v1441_v23  ;;  %v1516_v2 = vmax.f32 %v1402_v10, %v1409_v17 }
 0x176   : > { %v1430_v33 = vmax.f32 %v1428_v15, %v1429_v25  ;;  %v1448_v34 = vrot.slane %v1447_v26, 2  ;;  %v1070_v35 = vcombine.high %v2310_v9, %v2320_v12  ;;  %v1077_v36 = vrot.slane %v1069_v27, %v2305_v58 }
 0x177   : > { %v1436_v37 = vrot.slane %v1435_v31, 1  ;;  %v1443_v38 = vrot.slane %v1442_v32, 1  ;;  %v1517_v39 = vmax.f32 %v1416_v24, %v1423_v30  ;;  %v1105_v40 = vcombine.low %v2313_v59, %v2323_v13 }
 0x178   : > { %v1449_v41 = vmax.f32 %v1447_v26, %v1448_v34  ;;  %v1084_v42 = vrot.slane %v1070_v35, %v2305_v58  ;;  %v1085_v43 = vcombine.high %v1077_v36, %v1077_v36  ;;  %v1161_v11 = vrot.slane %v1077_v36, %v2305_v58 }
 0x179   : > { %v1437_v19 = vmax.f32 %v1435_v31, %v1436_v37  ;;  %v1444_v44 = vmax.f32 %v1442_v32, %v1443_v38  ;;  %v1554_v45 = vsel %vm1540_vm3, %v1517_v39, %v1516_v2  ;;  %v1106_v9 = vcombine.high %v2313_v59, %v2323_v13 }
 0x17a   : > { %v1450_v12 = vrot.slane %v1449_v41, 1  ;;  %v1086_v46 = vcombine.high %v1084_v42, %v1084_v42  ;;  %v1162_v47 = vcombine.high %v1161_v11, %v1161_v11  ;;  %v1169_v48 = vrot.slane %v1085_v43, %v2305_v58 }
 0x17b   : > { %v1518_v20 = vmax.f32 %v1430_v33, %v1437_v19  ;;  %v1177_v28 = vrot.slane %v1084_v42, %v2305_v58  ;;  %v1340_v49 = vsel %vm1283_vm2, %v1161_v11, -inf  ;;  %v2394_v50 = vrot.slane %v1105_v40, %v2305_v58 }
 0x17c   : > { %v1451_v51 = vmax.f32 %v1449_v41, %v1450_v12  ;;  %v1170_v52 = vcombine.high %v1169_v48, %v1169_v48  ;;  %v1185_v29 = vrot.slane %v1086_v46, %v2305_v58  ;;  %v1341_v53 = vrot.slane %v1340_v49, 4 }
 0x17d   : > { %v1555_v54 = vsel %vm1542_vm4, %v1518_v20, %v1554_v45  ;;  %v1178_v56 = vcombine.high %v1177_v28, %v1177_v28  ;;  %v1347_v57 = vsel %vm1283_vm2, %v1162_v47, -inf  ;;  %v1354_v60 = vsel %vm1283_vm2, %v1169_v48, -inf }
 0x17e   : > { %v1519_v61 = vmax.f32 %v1444_v44, %v1451_v51  ;;  %v1186_v62 = vcombine.high %v1185_v29, %v1185_v29  ;;  %v1342_v63 = vmax.f32 %v1340_v49, %v1341_v53  ;;  %v1348_v21 = vrot.slane %v1347_v57, 4 }
 0x17f   : > { %v1355_v0 = vrot.slane %v1354_v60, 4  ;;  %v1361_v1 = vsel %vm1283_vm2, %v1170_v52, -inf  ;;  %v1368_v3 = vsel %vm1283_vm2, %v1177_v28, -inf  ;;  %v1375_v4 = vsel %vm1283_vm2, %v1178_v56, -inf }
 0x180   : > { %v2404_v5 = vsel %vm1544_vm5, %v1519_v61, %v1555_v54  ;;  %v1343_v6 = vrot.slane %v1342_v63, 2  ;;  %v1349_v7 = vmax.f32 %v1347_v57, %v1348_v21  ;;  %v1362_v8 = vrot.slane %v1361_v1, 4 }
 0x181   : > { %v1356_v10 = vmax.f32 %v1354_v60, %v1355_v0  ;;  %v1369_v14 = vrot.slane %v1368_v3, 4  ;;  %v1376_v15 = vrot.slane %v1375_v4, 4  ;;  %v1382_v16 = vsel %vm1283_vm2, %v1185_v29, -inf }
 0x182   : > { %v1344_v17 = vmax.f32 %v1342_v63, %v1343_v6  ;;  %v1350_v18 = vrot.slane %v1349_v7, 2  ;;  %v1363_v22 = vmax.f32 %v1361_v1, %v1362_v8  ;;  %v1383_v23 = vrot.slane %v1382_v16, 4 }
 0x183   : > { %v1357_v24 = vrot.slane %v1356_v10, 2  ;;  %v1370_v25 = vmax.f32 %v1368_v3, %v1369_v14  ;;  %v1377_v26 = vmax.f32 %v1375_v4, %v1376_v15  ;;  %v1389_v27 = vsel %vm1283_vm2, %v1186_v62, -inf }
 0x184   : > { %v1345_v30 = vrot.slane %v1344_v17, 1  ;;  %v1351_v31 = vmax.f32 %v1349_v7, %v1350_v18  ;;  %v1364_v32 = vrot.slane %v1363_v22, 2  ;;  %v1384_v2 = vmax.f32 %v1382_v16, %v1383_v23 }
 0x185   : > { %v1358_v33 = vmax.f32 %v1356_v10, %v1357_v24  ;;  %v1371_v34 = vrot.slane %v1370_v25, 2  ;;  %v1378_v35 = vrot.slane %v1377_v26, 2  ;;  %v1390_v36 = vrot.slane %v1389_v27, 4 }
 0x186   : > { %v1346_v37 = vmax.f32 %v1344_v17, %v1345_v30  ;;  %v1352_v38 = vrot.slane %v1351_v31, 1  ;;  %v1365_v39 = vmax.f32 %v1363_v22, %v1364_v32  ;;  %v1385_v40 = vrot.slane %v1384_v2, 2 }
 0x187   : > { %v1359_v41 = vrot.slane %v1358_v33, 1  ;;  %v1372_v42 = vmax.f32 %v1370_v25, %v1371_v34  ;;  %v1379_v43 = vmax.f32 %v1377_v26, %v1378_v35  ;;  %v1391_v11 = vmax.f32 %v1389_v27, %v1390_v36 }
 0x188   : > { %v1353_v19 = vmax.f32 %v1351_v31, %v1352_v38  ;;  %v1366_v44 = vrot.slane %v1365_v39, 1  ;;  %v1386_v45 = vmax.f32 %v1384_v2, %v1385_v40  ;;  %v1120_v12 = vrot.slane %v1106_v9, %v2305_v58 }
 0x189   : > { %v1360_v46 = vmax.f32 %v1358_v33, %v1359_v41  ;;  %v1373_v47 = vrot.slane %v1372_v42, 1  ;;  %v1380_v48 = vrot.slane %v1379_v43, 1  ;;  %v1392_v20 = vrot.slane %v1391_v11, 2 }
 0x18a   : > { %v1367_v28 = vmax.f32 %v1365_v39, %v1366_v44  ;;  %v1387_v49 = vrot.slane %v1386_v45, 1  ;;  %v1512_v51 = vmax.f32 %v1346_v37, %v1353_v19  ;;  %v1121_v52 = vcombine.high %v2394_v50, %v2394_v50 }
 0x18b   : > { %v1374_v29 = vmax.f32 %v1372_v42, %v1373_v47  ;;  %v1381_v53 = vmax.f32 %v1379_v43, %v1380_v48  ;;  %v1393_v54 = vmax.f32 %v1391_v11, %v1392_v20  ;;  %v1122_v56 = vcombine.high %v1120_v12, %v1120_v12 }
 0x18c   : > { %v1388_v57 = vmax.f32 %v1386_v45, %v1387_v49  ;;  %v1513_v60 = vmax.f32 %v1360_v46, %v1367_v28  ;;  %v1547_v59 = vsel %vm1546_vm6, %v1512_v51, %v2375_v55  ;;  %v1225_v13 = vrot.slane %v2394_v50, %v2305_v58 }
 0x18d   : > { %v1394_v9 = vrot.slane %v1393_v54, 1  ;;  %v1514_v61 = vmax.f32 %v1374_v29, %v1381_v53  ;;  %v1233_v62 = vrot.slane %v1121_v52, %v2305_v58  ;;  %v1241_v63 = vrot.slane %v1120_v12, %v2305_v58 }
 0x18e   : > { %v1549_v21 = vsel %vm1548_vm7, %v1513_v60, %v1547_v59  ;;  %v1226_v0 = vcombine.high %v1225_v13, %v1225_v13  ;;  %v1249_v1 = vrot.slane %v1122_v56, %v2305_v58  ;;  %v1452_v3 = vsel %vm1283_vm2, %v1225_v13, -inf }
 0x18f   : > { %v1395_v4 = vmax.f32 %v1393_v54, %v1394_v9  ;;  %v1551_v55 = vsel %vm1550_vm8, %v1514_v61, %v1549_v21  ;;  %v1234_v6 = vcombine.high %v1233_v62, %v1233_v62  ;;  %v1242_v7 = vcombine.high %v1241_v63, %v1241_v63 }
 0x190   : > { %v1250_v50 = vcombine.high %v1249_v1, %v1249_v1  ;;  %v1453_v8 = vrot.slane %v1452_v3, 4  ;;  %v1459_v10 = vsel %vm1283_vm2, %v1226_v0, -inf  ;;  %v1466_v14 = vsel %vm1283_vm2, %v1233_v62, -inf }
 0x191   : > { %v1515_v58 = vmax.f32 %v1388_v57, %v1395_v4  ;;  %v1460_v15 = vrot.slane %v1459_v10, 4  ;;  %v1467_v16 = vrot.slane %v1466_v14, 4  ;;  %v1473_v17 = vsel %vm1283_vm2, %v1234_v6, -inf }
 0x192   : > { %v1454_v18 = vmax.f32 %v1452_v3, %v1453_v8  ;;  %v1474_v22 = vrot.slane %v1473_v17, 4  ;;  %v1480_v23 = vsel %vm1283_vm2, %v1241_v63, -inf  ;;  %v1487_v24 = vsel %vm1283_vm2, %v1242_v7, -inf }
 0x193   : > { %v1553_v25 = vsel %vm1552_vm9, %v1515_v58, %v1551_v55  ;;  %v1461_v26 = vmax.f32 %v1459_v10, %v1460_v15  ;;  %v1468_v27 = vmax.f32 %v1466_v14, %v1467_v16  ;;  %v1481_v30 = vrot.slane %v1480_v23, 4 }
 0x194   : > { %1563 = vst [vmem:[%s2430_s14] sm:$0xff] %v1553_v25  ;;  %v1455_v31 = vrot.slane %v1454_v18, 2  ;;  %v1475_v32 = vmax.f32 %v1473_v17, %v1474_v22  ;;  %v1488_v2 = vrot.slane %v1487_v24, 4  ;;  %v1494_v33 = vsel %vm1283_vm2, %v1249_v1, -inf }
 0x195   : > { %v1462_v34 = vrot.slane %v1461_v26, 2  ;;  %v1469_v35 = vrot.slane %v1468_v27, 2  ;;  %v1482_v36 = vmax.f32 %v1480_v23, %v1481_v30  ;;  %v1495_v37 = vrot.slane %v1494_v33, 4 }
 0x196   : > { %v1456_v38 = vmax.f32 %v1454_v18, %v1455_v31  ;;  %v1476_v39 = vrot.slane %v1475_v32, 2  ;;  %v1489_v40 = vmax.f32 %v1487_v24, %v1488_v2  ;;  %v1501_v41 = vsel %vm1283_vm2, %v1250_v50, -inf }
 0x197   : > { %v1463_v42 = vmax.f32 %v1461_v26, %v1462_v34  ;;  %v1470_v43 = vmax.f32 %v1468_v27, %v1469_v35  ;;  %v1483_v11 = vrot.slane %v1482_v36, 2  ;;  %v1496_v19 = vmax.f32 %v1494_v33, %v1495_v37 }
 0x198   : > { %v1457_v44 = vrot.slane %v1456_v38, 1  ;;  %v1477_v45 = vmax.f32 %v1475_v32, %v1476_v39  ;;  %v1490_v12 = vrot.slane %v1489_v40, 2  ;;  %v1502_v46 = vrot.slane %v1501_v41, 4 }
 0x199   : > { %v1464_v47 = vrot.slane %v1463_v42, 1  ;;  %v1471_v48 = vrot.slane %v1470_v43, 1  ;;  %v1484_v20 = vmax.f32 %v1482_v36, %v1483_v11  ;;  %v1497_v28 = vrot.slane %v1496_v19, 2 }
 0x19a   : > { %v1478_v49 = vrot.slane %v1477_v45, 1  ;;  %v1491_v51 = vmax.f32 %v1489_v40, %v1490_v12  ;;  %v1503_v52 = vmax.f32 %v1501_v41, %v1502_v46  ;;  %v1458_v29 = vmax.f32 %v1456_v38, %v1457_v44 }
 0x19b   : > { %v1465_v53 = vmax.f32 %v1463_v42, %v1464_v47  ;;  %v1485_v54 = vrot.slane %v1484_v20, 1  ;;  %v1498_v56 = vmax.f32 %v1496_v19, %v1497_v28  ;;  %v1472_v57 = vmax.f32 %v1470_v43, %v1471_v48 }
 0x19c   : > { %v1479_v60 = vmax.f32 %v1477_v45, %v1478_v49  ;;  %v1492_v59 = vrot.slane %v1491_v51, 1  ;;  %v1504_v13 = vrot.slane %v1503_v52, 2 }
 0x19d   : > { %v1486_v9 = vmax.f32 %v1484_v20, %v1485_v54  ;;  %v1520_v61 = vmax.f32 %v1458_v29, %v1465_v53  ;;  %v1499_v63 = vrot.slane %v1498_v56, 1 }
 0x19e   : > { %v1493_v62 = vmax.f32 %v1491_v51, %v1492_v59  ;;  %v1505_v21 = vmax.f32 %v1503_v52, %v1504_v13  ;;  %v1521_v0 = vmax.f32 %v1472_v57, %v1479_v60 }
 0x19f   : > { %v1557_v1 = vsel %vm1546_vm6, %v1520_v61, %v2404_v5  ;;  %v1500_v6 = vmax.f32 %v1498_v56, %v1499_v63 }
 0x1a0   : > { %v1506_v3 = vrot.slane %v1505_v21, 1  ;;  %v1522_v4 = vmax.f32 %v1486_v9, %v1493_v62  ;;  %v1558_v55 = vsel %vm1548_vm7, %v1521_v0, %v1557_v1 }
 0x1a2   : > { %v1507_v7 = vmax.f32 %v1505_v21, %v1506_v3  ;;  %v1559_v50 = vsel %vm1550_vm8, %v1522_v4, %v1558_v55 }
 0x1a4   : > { %v1523_v8 = vmax.f32 %v1500_v6, %v1507_v7 }
 0x1a6   : > { %v1560_v10 = vsel %vm1552_vm9, %v1523_v8, %v1559_v50 }
 0x1a7   : > { %1564 = vst [vmem:[%s2430_s14 + $0x8] sm:$0xff] %v1560_v10 }
 0x1a8 PF: > { %s13_s12 = sadd.s32 1, %s1980_s12  }
 0x1a9   : > { %p10_p4 = scmp.ge.s32.totalorder %s13_s12, 4  }
 0x1ab   :  { %12 = sbr.rel (!%p10_p4) target bundleno = 1 (0x1), region = 66 }

// kernel: net_forward.4
= control target key start
LH: loop header
LB: loop body
LE: loop exit
PB: predicated region body
PF: predicated region fallthrough
CT: control target
= control target key end

     0   :  { %s1922_s12 = smov 0   ;;  %s2344_s0 = inlined_call_operand.vmem [shape: f32[2,20,160], index: 0, kind: input, shape index: {}]   ;;  %s2345_s1 = inlined_call_operand.vmem [shape: bf16[5,160,256], index: 1, kind: input, shape index: {}]   ;;  %s2346_s2 = inlined_call_operand.vmem [shape: f32[1,256], index: 2, kind: input, shape index: {}]   ;;  %s2347_s3 = inlined_call_operand.vmem [shape: f32[2,8,128], index: 3, kind: output, shape index: {}]  }
   0x1 LB: > { %s1503_s13 = sadd.s32 4294967295, %s1899_s12   ;;  %p1507_p0 = scmp.ge.s32.totalorder %s1899_s12, 1  ;;  %s1899_s12 = sphi %s1922_s12, %s13_s12  }
   0x2   : > { %p137_p1 = scmp.lt.s32.totalorder %s1899_s12, 3 }
   0x4   : > { %p138_p2 = pnand %p1507_p0, %p137_p1 }
   0x5   : > { %v1727_v0 = vld [vmem:[%s2345_s1 + $0xa4] ss:$8 sps:$4 sm:$0xff] (!%p138_p2)   ;;  %v1731_v2 = vld [vmem:[%s2345_s1 + $0xa0] ss:$8 sps:$4 sm:$0xff] (!%p138_p2)   ;;  %v1733_v4 = vld [vmem:[%s2345_s1 + $0xb4] ss:$8 sps:$4 sm:$0xff] (!%p138_p2)  }
   0x6   : > { %141 = sbr.rel (%p138_p2) target bundleno = 422 (0x1a6), region = 32  ;;  %v1729_v1 = vld [vmem:[%s2345_s1 + $0x144] ss:$8 sps:$4 sm:$0xff] (!%p138_p2)   ;;  %355 = vmatprep.subr.bf16.mxu1 (!%p138_p2), %v1727_v0  ;;  %v1732_v3 = vld [vmem:[%s2345_s1 + $0x140] ss:$8 sps:$4 sm:$0xff] (!%p138_p2)   ;;  %p160_p3 = scmp.lt.s32.totalorder (!%p138_p2), %s1503_s13, 1 }
   0x7   : > { %688 = vmatprep.subr.bf16.mxu0 (!%p138_p2), %v1729_v1  ;;  %356 = vmatpush1.bf16.msra.mxu1 (!%p138_p2), %v1731_v2  ;;  %v1735_v5 = vld [vmem:[%s2345_s1 + $0x154] ss:$8 sps:$4 sm:$0xff] (!%p138_p2)   ;;  %v1737_v6 = vld [vmem:[%s2345_s1 + $0xb0] ss:$8 sps:$4 sm:$0xff] (!%p138_p2)   ;;  %v1739_v8 = vld [vmem:[%s2345_s1 + $0xc4] ss:$8 sps:$4 sm:$0xff] (!%p138_p2)  }
   0x8   : > { %689 = vmatpush1.bf16.msra.mxu0 (!%p138_p2), %v1732_v3  ;;  %357 = vmatprep.subr.bf16.mxu1 (!%p138_p2), %v1733_v4  ;;  %v1738_v7 = vld [vmem:[%s2345_s1 + $0x150] ss:$8 sps:$4 sm:$0xff] (!%p138_p2)   ;;  %v1741_v9 = vld [vmem:[%s2345_s1 + $0x164] ss:$8 sps:$4 sm:$0xff] (!%p138_p2)   ;;  %v1743_v10 = vld [vmem:[%s2345_s1 + $0xc0] ss:$8 sps:$4 sm:$0xff] (!%p138_p2)  }
   0x9   : > { %690 = vmatprep.subr.bf16.mxu0 (!%p138_p2), %v1735_v5  ;;  %v1744_v11 = vld [vmem:[%s2345_s1 + $0x160] ss:$8 sps:$4 sm:$0xff] (!%p138_p2)   ;;  %v1745_v12 = vld [vmem:[%s2345_s1 + $0xd4] ss:$8 sps:$4 sm:$0xff] (!%p138_p2)   ;;  %v1749_v14 = vld [vmem:[%s2345_s1 + $0xd0] ss:$8 sps:$4 sm:$0xff] (!%p138_p2)  }
   0xa   : > { %v1747_v13 = vld [vmem:[%s2345_s1 + $0x174] ss:$8 sps:$4 sm:$0xff] (!%p138_p2)   ;;  %v1750_v15 = vld [vmem:[%s2345_s1 + $0x170] ss:$8 sps:$4 sm:$0xff] (!%p138_p2)   ;;  %v1751_v16 = vld [vmem:[%s2345_s1 + $0xe4] ss:$8 sps:$4 sm:$0xff] (!%p138_p2)  }
   0xb   : > { %358 = vmatpush1.bf16.msra.mxu1 (!%p138_p2), %v1737_v6  ;;  %v1753_v17 = vld [vmem:[%s2345_s1 + $0x184] ss:$8 sps:$4 sm:$0xff] (!%p138_p2)   ;;  %v1755_v18 = vld [vmem:[%s2345_s1 + $0xe0] ss:$8 sps:$4 sm:$0xff] (!%p138_p2)   ;;  %v1757_v20 = vld [vmem:[%s2345_s1 + $0xf4] ss:$8 sps:$4 sm:$0xff] (!%p138_p2)  }
   0xc   : > { %691 = vmatpush1.bf16.msra.mxu0 (!%p138_p2), %v1738_v7  ;;  %359 = vmatprep.subr.bf16.mxu1 (!%p138_p2), %v1739_v8  ;;  %v1756_v19 = vld [vmem:[%s2345_s1 + $0x180] ss:$8 sps:$4 sm:$0xff] (!%p138_p2)   ;;  %v1759_v21 = vld [vmem:[%s2345_s1 + $0x194] ss:$8 sps:$4 sm:$0xff] (!%p138_p2)   ;;  %v1761_v22 = vld [vmem:[%s2345_s1 + $0xf0] ss:$8 sps:$4 sm:$0xff] (!%p138_p2)  }
   0xd   : > { %692 = vmatprep.subr.bf16.mxu0 %v1741_v9  ;;  %s2349_s13 = smov (!%p160_p3, %s1503_s13), 1  ;;  %v1762_v23 = vld [vmem:[%s2345_s1 + $0x190] ss:$8 sps:$4 sm:$0xff]   ;;  %v1763_v24 = vld [vmem:[%s2345_s1 + $0x104] ss:$8 sps:$4 sm:$0xff]   ;;  %vm577_vm1 = vcmask 1046528  }
   0xe   : > { %s1717_s8 = smul.u32 48, %s2349_s13  ;;  %v1765_v25 = vld [vmem:[%s2345_s1 + $0x1a4] ss:$8 sps:$4 sm:$0xff]   ;;  %v1767_v26 = vld [vmem:[%s2345_s1 + $0x100] ss:$8 sps:$4 sm:$0xff]   ;;  %vm351_vm2 = vcmask 261120  }
   0xf   : > { %360 = vmatpush1.bf16.msra.mxu1 %v1743_v10  ;;  %v1768_v27 = vld [vmem:[%s2345_s1 + $0x1a0] ss:$8 sps:$4 sm:$0xff]   ;;  %v1769_v28 = vld [vmem:[%s2345_s1 + $0x114] ss:$8 sps:$4 sm:$0xff]   ;;  %vm225_vm0 = vsmask.f32 7424 }
  0x10   : > { %693 = vmatpush1.bf16.msra.mxu0 %v1744_v11  ;;  %361 = vmatprep.subr.bf16.mxu1 %v1745_v12  ;;  %s2024_s23 = scalar_lea.vmem %s2344_s0, %s1717_s8  ;;  %v1771_v29 = vld [vmem:[%s2345_s1 + $0x1b4] ss:$8 sps:$4 sm:$0xff]   ;;  %v1773_v30 = vld [vmem:[%s2345_s1 + $0x110] ss:$8 sps:$4 sm:$0xff]   ;;  %v1775_v35 = vld [vmem:[%s2345_s1 + $0x124] ss:$8 sps:$4 sm:$0xff]  }
  0x11   : > { %694 = vmatprep.subr.bf16.mxu0 %v1747_v13  ;;  %v1774_v31 = vld [vmem:[%s2345_s1 + $0x1b0] ss:$8 sps:$4 sm:$0xff]   ;;  %v197_v33 = vld [vmem:[%s2024_s23 + $0x8] sm:$0xfe]  ;;  %v199_v34 = vld [vmem:[%s2024_s23 + $0x28] sm:$0x1] }
  0x12   : > { %v2039_v32 = vld [vmem:[%s2024_s23 + $0x18] sm:$0xff]  ;;  %v1777_v36 = vld [vmem:[%s2345_s1 + $0x1c4] ss:$8 sps:$4 sm:$0xff]   ;;  %v203_v38 = vpack.c.bf16 %v199_v34, %v199_v34  ;;  %v547_v40 = vld [vmem:[%s2024_s23 + $0x28] sm:$0x3]  ;;  %vm983_vm4 = vcmask 1045504  }
  0x13   : > { %362 = vmatpush1.bf16.msra.mxu1 %v1749_v14  ;;  %v201_v37 = vpack.c.bf16 %v2039_v32, %v197_v33  ;;  %v545_v39 = vld [vmem:[%s2024_s23 + $0x8] sm:$0xfc]  ;;  %v1781_v47 = vld [vmem:[%s2345_s1 + $0x134] ss:$8 sps:$4 sm:$0xff]   ;;  %v551_v49 = vpack.c.bf16 %v547_v40, %v547_v40  ;;  %v196_v51 = vld [vmem:[%s2024_s23] sm:$0xfe] }
  0x14   : > { %695 = vmatpush1.bf16.msra.mxu0 %v1750_v15  ;;  %363 = vmatprep.subr.bf16.mxu1 %v1751_v16  ;;  %v1779_v41 = vld [vmem:[%s2345_s1 + $0x120] ss:$8 sps:$4 sm:$0xff]   ;;  %v246_v45 = vshll.u32 %v203_v38, 16  ;;  %v549_v46 = vpack.c.bf16 %v2039_v32, %v545_v39  ;;  %v1783_v48 = vld [vmem:[%s2345_s1 + $0x1d4] ss:$8 sps:$4 sm:$0xff]   ;;  %vm1305_vm5 = vcmask 1041408  }
  0x15   : > { %696 = vmatprep.subr.bf16.mxu0 %v1753_v17  ;;  %v1780_v42 = vld [vmem:[%s2345_s1 + $0x1c0] ss:$8 sps:$4 sm:$0xff]   ;;  %v239_v43 = vshrl.u32 %v201_v37, 16  ;;  %v241_v44 = vshll.u32 %v201_v37, 16  ;;  %v2066_v50 = vld [vmem:[%s2024_s23 + $0x10] sm:$0xff]  ;;  %v582_v57 = vrot.slane %v551_v49, 1 }
  0x16   : > { %v248_v53 = vrot.slane %v246_v45, 1  ;;  %v581_v54 = vrot.slane %v549_v46, 1  ;;  %v198_v55 = vld [vmem:[%s2024_s23 + $0x20] sm:$0x1]  ;;  %v200_v56 = vpack.c.bf16 %v2066_v50, %v196_v51  ;;  %v544_v59 = vld [vmem:[%s2024_s23] sm:$0xfc] }
  0x17   : > { %364 = vmatpush1.bf16.msra.mxu1 %v1755_v18  ;;  %v243_v52 = vrot.slane %v241_v44, 1  ;;  %v202_v58 = vpack.c.bf16 %v198_v55, %v198_v55  ;;  %v546_v60 = vld [vmem:[%s2024_s23 + $0x20] sm:$0x3]  ;;  %v548_v0 = vpack.c.bf16 %v2066_v50, %v544_v59  ;;  %v1785_v1 = vld [vmem:[%s2345_s1 + $0x130] ss:$8 sps:$4 sm:$0xff]   ;;  %v171_v39 = vld [vmem:[%s2024_s23 + $0x8] sm:$0xff] }
  0x18   : > { %697 = vmatpush1.bf16.msra.mxu0 %v1756_v19  ;;  %365 = vmatprep.subr.bf16.mxu1 %v1757_v20  ;;  %v227_v62 = vshrl.u32 %v200_v56, 16  ;;  %v229_v63 = vshll.u32 %v200_v56, 16  ;;  %v583_v2 = vsel %vm577_vm1, %v581_v54, %v582_v57  ;;  %v550_v4 = vpack.c.bf16 %v546_v60, %v546_v60  ;;  %v1786_v5 = vld [vmem:[%s2345_s1 + $0x1d0] ss:$8 sps:$4 sm:$0xff]   ;;  %v1789_v9 = vld [vmem:[%s2345_s1 + $0x4] ss:$8 sps:$4 sm:$0xff]  }
  0x19   : > { %698 = vmatprep.subr.bf16.mxu0 %v1759_v21  ;;  %v244_v61 = vor.u32 %v243_v52, %v239_v43  ;;  %v234_v3 = vshll.u32 %v202_v58, 16  ;;  %v578_v8 = vrot.slane %v548_v0, 1  ;;  %v1792_v10 = vld [vmem:[%s2345_s1 + $0x1e4] ss:$8 sps:$4 sm:$0xff]   ;;  %1612 = vmatprep.mubr.msk.bf16.mxu0 %vm351_vm2, %v583_v2  ;;  %v1787_v14 = vld [vmem:[%s2345_s1] ss:$8 sps:$4 sm:$0xff]  }
  0x1a   : > { %v231_v7 = vrot.slane %v229_v63, 1  ;;  %v579_v12 = vrot.slane %v550_v4, 1  ;;  %v1790_v15 = vld [vmem:[%s2345_s1 + $0x1e0] ss:$8 sps:$4 sm:$0xff]   ;;  %v1795_v18 = vld [vmem:[%s2345_s1 + $0x14] ss:$8 sps:$4 sm:$0xff]  }
  0x1b   : > { %366 = vmatpush1.bf16.msra.mxu1 %v1761_v22  ;;  %v249_v6 = vsel %vm225_vm0, %v244_v61, %v248_v53  ;;  %v236_v11 = vrot.slane %v234_v3, 1  ;;  %v1798_v19 = vld [vmem:[%s2345_s1 + $0x1f4] ss:$8 sps:$4 sm:$0xff]   ;;  %v1793_v20 = vld [vmem:[%s2345_s1 + $0x10] ss:$8 sps:$4 sm:$0xff]   ;;  %vm1434_vm6 = vcmask 1041409  }
  0x1c   : > { %699 = vmatpush1.bf16.msra.mxu0 %v1762_v23  ;;  %367 = vmatprep.subr.bf16.mxu1 %v1763_v24  ;;  %v232_v13 = vor.u32 %v231_v7, %v227_v62  ;;  %v580_v17 = vsel %vm577_vm1, %v578_v8, %v579_v12  ;;  %v1796_v21 = vld [vmem:[%s2345_s1 + $0x1f0] ss:$8 sps:$4 sm:$0xff]   ;;  %v1801_v22 = vld [vmem:[%s2345_s1 + $0x24] ss:$8 sps:$4 sm:$0xff]   ;;  %v1799_v24 = vld [vmem:[%s2345_s1 + $0x20] ss:$8 sps:$4 sm:$0xff]  }
  0x1d   : > { %700 = vmatprep.subr.bf16.mxu0 %v1765_v25  ;;  %1550 = vmatprep.mubr.msk.bf16.mxu1 %vm351_vm2, %v249_v6  ;;  %v1804_v23 = vld [vmem:[%s2345_s1 + $0x204] ss:$8 sps:$4 sm:$0xff]   ;;  %v1802_v25 = vld [vmem:[%s2345_s1 + $0x200] ss:$8 sps:$4 sm:$0xff]   ;;  %v1817_v37 = vld [vmem:[%s2345_s1 + $0x50] ss:$8 sps:$4 sm:$0xff]  }
  0x1e   : > { %v237_v16 = vsel %vm225_vm0, %v232_v13, %v236_v11  ;;  %v1811_v33 = vld [vmem:[%s2345_s1 + $0x40] ss:$8 sps:$4 sm:$0xff]   ;;  %v1820_v38 = vld [vmem:[%s2345_s1 + $0x230] ss:$8 sps:$4 sm:$0xff]   ;;  %v1825_v44 = vld [vmem:[%s2345_s1 + $0x64] ss:$8 sps:$4 sm:$0xff]  }
  0x1f   : > { %368 = vmatpush1.bf16.msra.mxu1 %v1767_v26  ;;  %v1807_v26 = vld [vmem:[%s2345_s1 + $0x34] ss:$8 sps:$4 sm:$0xff]   ;;  %v1814_v34 = vld [vmem:[%s2345_s1 + $0x220] ss:$8 sps:$4 sm:$0xff]   ;;  %v1828_v45 = vld [vmem:[%s2345_s1 + $0x244] ss:$8 sps:$4 sm:$0xff]  }
  0x20   : > { %701 = vmatpush1.bf16.msra.mxu0 %v1768_v27  ;;  %369 = vmatprep.subr.bf16.mxu1 %v1769_v28  ;;  %v1810_v27 = vld [vmem:[%s2345_s1 + $0x214] ss:$8 sps:$4 sm:$0xff]   ;;  %v1805_v28 = vld [vmem:[%s2345_s1 + $0x30] ss:$8 sps:$4 sm:$0xff]   ;;  %v736_v40 = vld [vmem:[%s2024_s23 + $0x8] sm:$0xf8] }
  0x21   : > { %702 = vmatprep.subr.bf16.mxu0 %v1771_v29  ;;  %v1808_v29 = vld [vmem:[%s2345_s1 + $0x210] ss:$8 sps:$4 sm:$0xff]   ;;  %v740_v43 = vpack.c.bf16 %v2039_v32, %v736_v40  ;;  %v737_v51 = vld [vmem:[%s2024_s23 + $0x20] sm:$0x7]  ;;  %v1831_v60 = vld [vmem:[%s2345_s1 + $0x74] ss:$8 sps:$4 sm:$0xff]  }
  0x22   : > { %v1823_v54 = vld [vmem:[%s2345_s1 + $0x60] ss:$8 sps:$4 sm:$0xff]   ;;  %v741_v58 = vpack.c.bf16 %v737_v51, %v737_v51  ;;  %v1834_v63 = vld [vmem:[%s2345_s1 + $0x254] ss:$8 sps:$4 sm:$0xff]   ;;  %vm764_vm3 = vsmask.f32 6400 }
  0x23   : > { %370 = vmatpush1.bf16.msra.mxu1 %v1773_v30  ;;  %v1813_v30 = vld [vmem:[%s2345_s1 + $0x44] ss:$8 sps:$4 sm:$0xff]   ;;  %v786_v49 = vshll.u32 %v740_v43, 16  ;;  %v1826_v59 = vld [vmem:[%s2345_s1 + $0x240] ss:$8 sps:$4 sm:$0xff]   ;;  %vm1436_vm7 = vcmask 1042434  }
  0x24   : > { %703 = vmatpush1.bf16.msra.mxu0 %v1774_v31  ;;  %371 = vmatprep.subr.bf16.mxu1 %v1775_v35  ;;  %v1816_v31 = vld [vmem:[%s2345_s1 + $0x224] ss:$8 sps:$4 sm:$0xff]   ;;  %v1819_v35 = vld [vmem:[%s2345_s1 + $0x54] ss:$8 sps:$4 sm:$0xff]   ;;  %v777_v6 = vshll.u32 %v741_v58, 16  ;;  %vm1438_vm8 = vcmask 1043459  }
  0x25   : > { %704 = vmatprep.subr.bf16.mxu0 %v1777_v36  ;;  %v1822_v36 = vld [vmem:[%s2345_s1 + $0x234] ss:$8 sps:$4 sm:$0xff]   ;;  %v788_v56 = vrot.slane %v786_v49, 2  ;;  %v1832_v7 = vld [vmem:[%s2345_s1 + $0x250] ss:$8 sps:$4 sm:$0xff]   ;;  %vm1440_vm9 = vcmask 1044484  }
  0x26   : > { %v1835_v11 = vld [vmem:[%s2345_s1 + $0x80] ss:$8 sps:$4 sm:$0xff]   ;;  %v1852_v40 = vld [vmem:[%s2345_s1 + $0x294] ss:$8 sps:$4 sm:$0xff]   ;;  %v1862_v51 = vld [vmem:[%s2345_s1 + $0x2d0] ss:$8 sps:$4 sm:$0xff]  }
  0x27   : > { %372 = vmatpush1.bf16.msra.mxu1 %v1779_v41  ;;  %v175_v41 = vpack.c.bf16 %v2039_v32, %v171_v39  ;;  %v1864_v49 = vld [vmem:[%s2345_s1 + $0x2d4] ss:$8 sps:$4 sm:$0xff]   ;;  %vm1442_vm10 = vcmask 1045509   ;;  %vm1444_vm11 = vcmask 1046534   ;;  %s1509_s24 = sshll.u32 %s2349_s13, 3  ;;  %vm1446_vm12 = vcmask 1047559  }
  0x28   : > { %705 = vmatpush1.bf16.msra.mxu0 %v1780_v42  ;;  %373 = vmatprep.subr.bf16.mxu1 %v1781_v47  ;;  %v738_v42 = vld [vmem:[%s2024_s23 + $0x28] sm:$0x7]  ;;  %v735_v47 = vld [vmem:[%s2024_s23] sm:$0xf8]  ;;  %s168_s27 = scalar_lea.vmem %s2347_s3, %s1509_s24 }
  0x29   : > { %706 = vmatprep.subr.bf16.mxu0 %v1783_v48  ;;  %v742_v46 = vpack.c.bf16 %v738_v42, %v738_v42  ;;  %v783_v48 = vshrl.u32 %v740_v43, 16  ;;  %v739_v57 = vpack.c.bf16 %v2066_v50, %v735_v47  ;;  %v1855_v43 = vld [vmem:[%s2345_s1 + $0x2a4] ss:$8 sps:$4 sm:$0xff]  }
  0x2a   : > { %v1861_v47 = vld [vmem:[%s2345_s1 + $0x2c4] ss:$8 sps:$4 sm:$0xff]  }
  0x2b   : > { %374 = vmatpush1.bf16.msra.mxu1 %v1785_v1  ;;  %v791_v52 = vshrl.u32 %v742_v46, 16  ;;  %v794_v53 = vshll.u32 %v742_v46, 16  ;;  %v785_v55 = vrot.slane %v783_v48, 1  ;;  %v1829_v1 = vld [vmem:[%s2345_s1 + $0x70] ss:$8 sps:$4 sm:$0xff]   ;;  %v766_v3 = vshrl.u32 %v739_v57, 16 }
  0x2c   : > { %707 = vmatpush1.bf16.msra.mxu0 %v1786_v5  ;;  %501 = vmatprep.subr.bf16.mxu1 %v1789_v9  ;;  %v769_v4 = vshll.u32 %v739_v57, 16  ;;  %v774_v5 = vshrl.u32 %v741_v58, 16  ;;  %v1837_v9 = vld [vmem:[%s2345_s1 + $0x84] ss:$8 sps:$4 sm:$0xff]   ;;  %v1856_v46 = vld [vmem:[%s2345_s1 + $0x2b0] ss:$8 sps:$4 sm:$0xff]  }
  0x2d   : > { %903 = vmatprep.subr.bf16.mxu0 %v1792_v10  ;;  %v793_v61 = vrot.slane %v791_v52, 1  ;;  %v796_v62 = vrot.slane %v794_v53, 2  ;;  %v789_v0 = vor.u32 %v788_v56, %v785_v55  ;;  %v1840_v10 = vld [vmem:[%s2345_s1 + $0x264] ss:$8 sps:$4 sm:$0xff]   ;;  %v768_v12 = vrot.slane %v766_v3, 1 }
  0x2e   : > { %388 = vmatmul.mubr.bf16.vlgmr.msra.gmra.mrb[0].mxu1 %v237_v16  ;;  %v771_v13 = vrot.slane %v769_v4, 2  ;;  %v1838_v16 = vld [vmem:[%s2345_s1 + $0x260] ss:$8 sps:$4 sm:$0xff]   ;;  %v1867_v52 = vld [vmem:[%s2345_s1 + $0x2e4] ss:$8 sps:$4 sm:$0xff]  }
  0x2f   : > { %721 = vmatmul.mubr.bf16.vlgmr.msra.gmra.mrb[0].mxu0 %v580_v17  ;;  %502 = vmatpush1.bf16.msra.mxu1 %v1787_v14  ;;  %v797_v2 = vor.u32 %v796_v62, %v793_v61  ;;  %v776_v14 = vrot.slane %v774_v5, 1  ;;  %v1843_v17 = vld [vmem:[%s2345_s1 + $0x94] ss:$8 sps:$4 sm:$0xff]   ;;  %v1859_v48 = vld [vmem:[%s2345_s1 + $0x2c0] ss:$8 sps:$4 sm:$0xff]  }
  0x30   : > { %904 = vmatpush1.bf16.msra.mxu0 %v1790_v15  ;;  %503 = vmatprep.subr.bf16.mxu1 %v1795_v18  ;;  %v779_v15 = vrot.slane %v777_v6, 2  ;;  %v1846_v18 = vld [vmem:[%s2345_s1 + $0x274] ss:$8 sps:$4 sm:$0xff]   ;;  %v1865_v53 = vld [vmem:[%s2345_s1 + $0x2e0] ss:$8 sps:$4 sm:$0xff]  }
  0x31   : > { %905 = vmatprep.subr.bf16.mxu0 %v1798_v19  ;;  %1571 = vmatprep.mubr.msk.bf16.mxu1 %vm351_vm2, %v175_v41  ;;  %v798_v8 = vsel %vm764_vm3, %v789_v0, %v797_v2  ;;  %v1841_v19 = vld [vmem:[%s2345_s1 + $0x90] ss:$8 sps:$4 sm:$0xff]   ;;  %v1873_v56 = vld [vmem:[%s2345_s1 + $0x304] ss:$8 sps:$4 sm:$0xff]   ;;  %v1871_v57 = vld [vmem:[%s2345_s1 + $0x300] ss:$8 sps:$4 sm:$0xff]   ;;  %v1143_v0 = vlaneseq }
  0x32   : > { %1653 = vmatprep.mubr.msk.bf16.mxu0 %vm351_vm2, %v798_v8  ;;  %v1868_v55 = vld [vmem:[%s2345_s1 + $0x2f0] ss:$8 sps:$4 sm:$0xff]   ;;  %v1876_v58 = vld [vmem:[%s2345_s1 + $0x314] ss:$8 sps:$4 sm:$0xff]   ;;  %v1141_v3 = vld [vmem:[%s2346_s2] sm:$0x3] }
  0x33   : > { %504 = vmatpush1.bf16.msra.mxu1 %v1793_v20  ;;  %v772_v20 = vor.u32 %v771_v13, %v768_v12 }
  0x34   : > { %906 = vmatpush1.bf16.msra.mxu0 %v1796_v21  ;;  %505 = vmatprep.subr.bf16.mxu1 %v1801_v22  ;;  %v780_v21 = vor.u32 %v779_v15, %v776_v14  ;;  %v951_v22 = vld [vmem:[%s2024_s23 + $0x8] sm:$0xf0] }
  0x35   : > { %907 = vmatprep.subr.bf16.mxu0 %v1804_v23  ;;  %v953_v23 = vld [vmem:[%s2024_s23 + $0x28] sm:$0xf] }
  0x36   : > { %v781_v39 = vsel %vm764_vm3, %v772_v20, %v780_v21 }
  0x37   : > { %506 = vmatpush1.bf16.msra.mxu1 %v1799_v24  ;;  %v950_v24 = vld [vmem:[%s2024_s23] sm:$0xf0] }
  0x38   : > { %908 = vmatpush1.bf16.msra.mxu0 %v1802_v25  ;;  %507 = vmatprep.subr.bf16.mxu1 %v1807_v26  ;;  %v1844_v25 = vld [vmem:[%s2345_s1 + $0x270] ss:$8 sps:$4 sm:$0xff]   ;;  %v170_v26 = vld [vmem:[%s2024_s23] sm:$0xff] }
  0x39   : > { %909 = vmatprep.subr.bf16.mxu0 %v1810_v27  ;;  %v955_v27 = vpack.c.bf16 %v2039_v32, %v951_v22  ;;  %v1847_v32 = vld [vmem:[%s2345_s1 + $0x280] ss:$8 sps:$4 sm:$0xff]  }
  0x3b   : > { %508 = vmatpush1.bf16.msra.mxu1 %v1805_v28  ;;  %v957_v28 = vpack.c.bf16 %v953_v23, %v953_v23 }
  0x3c   : > { %910 = vmatpush1.bf16.msra.mxu0 %v1808_v29  ;;  %509 = vmatprep.subr.bf16.mxu1 %v1813_v30  ;;  %v952_v29 = vld [vmem:[%s2024_s23 + $0x20] sm:$0xf]  ;;  %v954_v30 = vpack.c.bf16 %v2066_v50, %v950_v24 }
  0x3d   : > { %911 = vmatprep.subr.bf16.mxu0 %v1816_v31  ;;  %v1849_v31 = vld [vmem:[%s2345_s1 + $0x284] ss:$8 sps:$4 sm:$0xff]  }
  0x3f   : > { %510 = vmatpush1.bf16.msra.mxu1 %v1811_v33  ;;  %v956_v33 = vpack.c.bf16 %v952_v29, %v952_v29 }
  0x40   : > { %912 = vmatpush1.bf16.msra.mxu0 %v1814_v34  ;;  %511 = vmatprep.subr.bf16.mxu1 %v1819_v35  ;;  %v987_v34 = vrot.slane %v955_v27, 2  ;;  %v988_v35 = vrot.slane %v957_v28, 2 }
  0x41   : > { %913 = vmatprep.subr.bf16.mxu0 %v1822_v36  ;;  %v984_v36 = vrot.slane %v954_v30, 2 }
  0x42   : > { %v989_v41 = vsel %vm983_vm4, %v987_v34, %v988_v35 }
  0x43   : > { %512 = vmatpush1.bf16.msra.mxu1 %v1817_v37  ;;  %v174_v37 = vpack.c.bf16 %v2066_v50, %v170_v26  ;;  %v1850_v50 = vld [vmem:[%s2345_s1 + $0x290] ss:$8 sps:$4 sm:$0xff]  }
  0x44   : > { %914 = vmatpush1.bf16.msra.mxu0 %v1820_v38  ;;  %513 = vmatprep.subr.bf16.mxu1 %v1825_v44  ;;  %v985_v38 = vrot.slane %v956_v33, 2  ;;  %v1853_v44 = vld [vmem:[%s2345_s1 + $0x2a0] ss:$8 sps:$4 sm:$0xff]  }
  0x45   : > { %915 = vmatprep.subr.bf16.mxu0 %v1828_v45  ;;  %v1858_v45 = vld [vmem:[%s2345_s1 + $0x2b4] ss:$8 sps:$4 sm:$0xff]  }
  0x46   : > { %v986_v42 = vsel %vm983_vm4, %v984_v36, %v985_v38 }
  0x47   : > { %514 = vmatpush1.bf16.msra.mxu1 %v1823_v54  ;;  %v1870_v54 = vld [vmem:[%s2345_s1 + $0x2f4] ss:$8 sps:$4 sm:$0xff]  }
  0x48   : > { %916 = vmatpush1.bf16.msra.mxu0 %v1826_v59  ;;  %515 = vmatprep.subr.bf16.mxu1 %v1831_v60  ;;  %v1874_v59 = vld [vmem:[%s2345_s1 + $0x310] ss:$8 sps:$4 sm:$0xff]  }
  0x49   : > { %917 = vmatprep.subr.bf16.mxu0 %v1834_v63 }
  0x4b   : > { %516 = vmatpush1.bf16.msra.mxu1 %v1829_v1  ;;  %v1144_v1 = vshrl.u32 %v1143_v0, 7 }
  0x4c   : > { %918 = vmatpush1.bf16.msra.mxu0 %v1832_v7  ;;  %517 = vmatprep.subr.bf16.mxu1 %v1837_v9 }
  0x4d   : > { %919 = vmatprep.subr.bf16.mxu0 %v1840_v10  ;;  %v1145_v2 = vsub.s32 0, %v1144_v1  ;;  %v1149_v4 = vsub.s32 1, %v1144_v1 }
  0x4f   : > { %518 = vmatpush1.bf16.msra.mxu1 %v1835_v11  ;;  %v1146_v5 = vrot.slane %v1141_v3, %v1145_v2  ;;  %v1150_v7 = vrot.slane %v1141_v3, %v1149_v4 }
  0x50   : > { %920 = vmatpush1.bf16.msra.mxu0 %v1838_v16  ;;  %519 = vmatprep.subr.bf16.mxu1 %v1843_v17 }
  0x51   : > { %921 = vmatprep.subr.bf16.mxu0 %v1846_v18 }
  0x53   : > { %520 = vmatpush1.bf16.msra.mxu1 %v1841_v19 }
  0x54   : > { %922 = vmatpush1.bf16.msra.mxu0 %v1844_v25 }
  0x55   : > { %1094 = vmatprep.subr.bf16.mxu0 %v1849_v31  ;;  %v1901_v31 = vmov 1983009808  }
  0x56   : > { %534 = vmatmul.mubr.bf16.vlgmr.msra.gmra.mrb[0].mxu1 %v174_v37  ;;  %v1192_v33 = vunpack.c.l.s4 %v1901_v31 }
  0x57   : > { %936 = vmatmul.mubr.bf16.vlgmr.msra.gmra.mrb[0].mxu0 %v781_v39 }
  0x58   : > { %1095 = vmatpush1.bf16.msra.mxu0 %v1847_v32  ;;  %1694 = vmatprep.mubr.msk.bf16.mxu0 %vm351_vm2, %v989_v41  ;;  %v1193_v34 = vunpack.c.0.s8 %v1192_v33 }
  0x59   : > { %1096 = vmatprep.subr.bf16.mxu0 %v1852_v40 }
  0x5a   : > { %v2290_v32 = vsub.s32 %v1193_v34, %v1144_v1 }
  0x5c   : > { %1097 = vmatpush1.bf16.msra.mxu0 %v1850_v50 }
  0x5d   : > { %1098 = vmatprep.subr.bf16.mxu0 %v1855_v43 }
  0x60   : > { %1099 = vmatpush1.bf16.msra.mxu0 %v1853_v44 }
  0x61   : > { %1100 = vmatprep.subr.bf16.mxu0 %v1858_v45 }
  0x64   : > { %1101 = vmatpush1.bf16.msra.mxu0 %v1856_v46 }
  0x65   : > { %1102 = vmatprep.subr.bf16.mxu0 %v1861_v47 }
  0x68   : > { %1103 = vmatpush1.bf16.msra.mxu0 %v1859_v48 }
  0x69   : > { %1104 = vmatprep.subr.bf16.mxu0 %v1864_v49 }
  0x6c   : > { %1105 = vmatpush1.bf16.msra.mxu0 %v1862_v51 }
  0x6d   : > { %1106 = vmatprep.subr.bf16.mxu0 %v1867_v52 }
  0x70   : > { %1107 = vmatpush1.bf16.msra.mxu0 %v1865_v53 }
  0x71   : > { %1108 = vmatprep.subr.bf16.mxu0 %v1870_v54 }
  0x74   : > { %1109 = vmatpush1.bf16.msra.mxu0 %v1868_v55 }
  0x75   : > { %1110 = vmatprep.subr.bf16.mxu0 %v1873_v56 }
  0x78   : > { %1111 = vmatpush1.bf16.msra.mxu0 %v1871_v57 }
  0x79   : > { %1112 = vmatprep.subr.bf16.mxu0 %v1876_v58 }
  0x7c   : > { %1113 = vmatpush1.bf16.msra.mxu0 %v1874_v59 }
  0x7f   : > { %1127 = vmatmul.mubr.bf16.vlgmr.msra.gmra.mrb[0].mxu0 %v986_v42 }
 0x129   : > { %v535_v60 = vpop.f32.mrb[0].mxu1 }
 0x12a   : > { %v537_v61 = vpop.f32.mrb[1].mxu1 }
 0x12b   : > { %v539_v62 = vpop.f32.mrb[2].mxu1 }
 0x12c   : > { %v541_v63 = vpop.f32.mrb[3].mxu1 }
 0x152   : > { %v1128_v6 = vpop.f32.mrb[0].mxu0 }
 0x153   : > { %v1701_v8 = vadd.f32 %v1128_v6, %v535_v60  ;;  %v1130_v9 = vpop.f32.mrb[1].mxu0 }
 0x154   : > { %v1702_v10 = vadd.f32 %v1130_v9, %v537_v61  ;;  %v1132_v11 = vpop.f32.mrb[2].mxu0 }
 0x155   : > { %v1153_v12 = vadd.f32 %v1701_v8, %v1146_v5  ;;  %v1703_v13 = vadd.f32 %v1132_v11, %v539_v62  ;;  %v1134_v14 = vpop.f32.mrb[3].mxu0 }
 0x156   : > { %v1154_v15 = vadd.f32 %v1702_v10, %v1150_v7  ;;  %v1704_v16 = vadd.f32 %v1134_v14, %v541_v63 }
 0x157   : > { %v1695_v17 = vmul.f32 -1.442695, %v1153_v12  ;;  %v1155_v18 = vadd.f32 %v1703_v13, %v1146_v5 }
 0x158   : > { %v1696_v19 = vmul.f32 -1.442695, %v1154_v15  ;;  %v1156_v20 = vadd.f32 %v1704_v16, %v1150_v7 }
 0x159   : > { %1877 = vpow2.f32 %v1695_v17  ;;  %v1697_v21 = vmul.f32 -1.442695, %v1155_v18 }
 0x15a   : > { %1879 = vpow2.f32 %v1696_v19  ;;  %v1698_v22 = vmul.f32 -1.442695, %v1156_v20 }
 0x15b   : > { %1881 = vpow2.f32 %v1697_v21 }
 0x15c   : > { %1883 = vpow2.f32 %v1698_v22 }
 0x163   : > { %v1878_v23 = vpop.eup %1877 }
 0x164   : > { %v1880_v24 = vpop.eup %1879  ;;  %v1169_v25 = vadd.f32 1.0, %v1878_v23 }
 0x165   : > { %v1882_v26 = vpop.eup %1881  ;;  %v1170_v27 = vadd.f32 1.0, %v1880_v24 }
 0x166   : > { %v1884_v28 = vpop.eup %1883  ;;  %1885 = vrcp.f32 %v1169_v25  ;;  %v1171_v29 = vadd.f32 1.0, %v1882_v26 }
 0x167   : > { %1887 = vrcp.f32 %v1170_v27  ;;  %v1172_v30 = vadd.f32 1.0, %v1884_v28 }
 0x168   : > { %1889 = vrcp.f32 %v1171_v29 }
 0x169   : > { %1891 = vrcp.f32 %v1172_v30 }
 0x170   : > { %v1886_v35 = vpop.eup %1885 }
 0x171   : > { %v1888_v36 = vpop.eup %1887  ;;  %v1181_v37 = vmul.f32 %v1886_v35, %v1153_v12 }
 0x172   : > { %v1890_v38 = vpop.eup %1889  ;;  %v1182_v39 = vmul.f32 %v1888_v36, %v1154_v15 }
 0x173   : > { %v1892_v40 = vpop.eup %1891  ;;  %v1183_v41 = vmul.f32 %v1890_v38, %v1155_v18 }
 0x174   : > { %v1189_v42 = vcombine.low %v1181_v37, %v1182_v39  ;;  %v1190_v50 = vcombine.high %v1181_v37, %v1182_v39  ;;  %v1184_v43 = vmul.f32 %v1892_v40, %v1156_v20 }
 0x176   : > { %v1197_v44 = vrot.slane %v1189_v42, %v2290_v32  ;;  %v1204_v45 = vrot.slane %v1190_v50, %v2290_v32  ;;  %v1207_v46 = vcombine.low %v1183_v41, %v1184_v43  ;;  %v1208_v47 = vcombine.high %v1183_v41, %v1184_v43 }
 0x178   : > { %v1205_v48 = vcombine.high %v1197_v44, %v1197_v44  ;;  %v1206_v49 = vcombine.high %v1204_v45, %v1204_v45  ;;  %v1231_v51 = vrot.slane %v1197_v44, %v2290_v32  ;;  %v1247_v52 = vrot.slane %v1204_v45, %v2290_v32 }
 0x179   : > { %v2297_v53 = vrot.slane %v1207_v46, %v2290_v32  ;;  %v2300_v54 = vrot.slane %v1208_v47, %v2290_v32 }
 0x17a   : > { %v1232_v55 = vcombine.high %v1231_v51, %v1231_v51  ;;  %v1239_v56 = vrot.slane %v1205_v48, %v2290_v32  ;;  %v1248_v57 = vcombine.high %v1247_v52, %v1247_v52  ;;  %v1255_v58 = vrot.slane %v1206_v49, %v2290_v32 }
 0x17b   : > { %v1306_v59 = vsel %vm1305_vm5, %v1231_v51, -inf  ;;  %v1334_v60 = vsel %vm1305_vm5, %v1247_v52, -inf  ;;  %v1223_v61 = vcombine.high %v2297_v53, %v2297_v53  ;;  %v1224_v62 = vcombine.high %v2300_v54, %v2300_v54 }
 0x17c   : > { %v1240_v63 = vcombine.high %v1239_v56, %v1239_v56  ;;  %v1256_v0 = vcombine.high %v1255_v58, %v1255_v58  ;;  %v1307_v1 = vrot.slane %v1306_v59, 4  ;;  %v1313_v2 = vsel %vm1305_vm5, %v1232_v55, -inf }
 0x17d   : > { %v1314_v3 = vrot.slane %v1313_v2, 4  ;;  %v1320_v4 = vsel %vm1305_vm5, %v1239_v56, -inf  ;;  %v1335_v5 = vrot.slane %v1334_v60, 4  ;;  %v1341_v6 = vsel %vm1305_vm5, %v1248_v57, -inf }
 0x17e   : > { %v1308_v7 = vmax.f32 %v1306_v59, %v1307_v1  ;;  %v1321_v8 = vrot.slane %v1320_v4, 4  ;;  %v1327_v9 = vsel %vm1305_vm5, %v1240_v63, -inf  ;;  %v1342_v10 = vrot.slane %v1341_v6, 4 }
 0x17f   : > { %v1315_v11 = vmax.f32 %v1313_v2, %v1314_v3  ;;  %v1328_v12 = vrot.slane %v1327_v9, 4  ;;  %v1336_v13 = vmax.f32 %v1334_v60, %v1335_v5  ;;  %v1348_v14 = vsel %vm1305_vm5, %v1255_v58, -inf }
 0x180   : > { %v1309_v15 = vrot.slane %v1308_v7, 2  ;;  %v1322_v16 = vmax.f32 %v1320_v4, %v1321_v8  ;;  %v1343_v17 = vmax.f32 %v1341_v6, %v1342_v10  ;;  %v1349_v18 = vrot.slane %v1348_v14, 4 }
 0x181   : > { %v1316_v19 = vrot.slane %v1315_v11, 2  ;;  %v1329_v20 = vmax.f32 %v1327_v9, %v1328_v12  ;;  %v1337_v21 = vrot.slane %v1336_v13, 2  ;;  %v1355_v22 = vsel %vm1305_vm5, %v1256_v0, -inf }
 0x182   : > { %v1310_v23 = vmax.f32 %v1308_v7, %v1309_v15  ;;  %v1323_v24 = vrot.slane %v1322_v16, 2  ;;  %v1344_v25 = vrot.slane %v1343_v17, 2  ;;  %v1350_v26 = vmax.f32 %v1348_v14, %v1349_v18 }
 0x183   : > { %v1317_v27 = vmax.f32 %v1315_v11, %v1316_v19  ;;  %v1330_v28 = vrot.slane %v1329_v20, 2  ;;  %v1338_v29 = vmax.f32 %v1336_v13, %v1337_v21  ;;  %v1356_v30 = vrot.slane %v1355_v22, 4 }
 0x184   : > { %v1311_v31 = vrot.slane %v1310_v23, 1  ;;  %v1324_v33 = vmax.f32 %v1322_v16, %v1323_v24  ;;  %v1345_v34 = vmax.f32 %v1343_v17, %v1344_v25  ;;  %v1351_v35 = vrot.slane %v1350_v26, 2 }
 0x185   : > { %v1318_v36 = vrot.slane %v1317_v27, 1  ;;  %v1331_v37 = vmax.f32 %v1329_v20, %v1330_v28  ;;  %v1339_v38 = vrot.slane %v1338_v29, 1  ;;  %v1357_v39 = vmax.f32 %v1355_v22, %v1356_v30 }
 0x186   : > { %v1312_v40 = vmax.f32 %v1310_v23, %v1311_v31  ;;  %v1325_v41 = vrot.slane %v1324_v33, 1  ;;  %v1346_v42 = vrot.slane %v1345_v34, 1  ;;  %v1352_v50 = vmax.f32 %v1350_v26, %v1351_v35 }
 0x187   : > { %v1319_v43 = vmax.f32 %v1317_v27, %v1318_v36  ;;  %v1332_v44 = vrot.slane %v1331_v37, 1  ;;  %v1340_v45 = vmax.f32 %v1338_v29, %v1339_v38  ;;  %v1358_v46 = vrot.slane %v1357_v39, 2 }
 0x188   : > { %v1326_v47 = vmax.f32 %v1324_v33, %v1325_v41  ;;  %v1347_v48 = vmax.f32 %v1345_v34, %v1346_v42  ;;  %v1353_v49 = vrot.slane %v1352_v50, 1  ;;  %v1263_v51 = vrot.slane %v2297_v53, %v2290_v32 }
 0x189   : > { %v1333_v52 = vmax.f32 %v1331_v37, %v1332_v44  ;;  %v1359_v55 = vmax.f32 %v1357_v39, %v1358_v46  ;;  %v1418_v56 = vmax.f32 %v1312_v40, %v1319_v43  ;;  %v1271_v57 = vrot.slane %v1223_v61, %v2290_v32 }
 0x18a   : > { %v1354_v58 = vmax.f32 %v1352_v50, %v1353_v49  ;;  %v1420_v59 = vmax.f32 %v1340_v45, %v1347_v48  ;;  %v1264_v60 = vcombine.high %v1263_v51, %v1263_v51  ;;  %v1279_v63 = vrot.slane %v2300_v54, %v2290_v32 }
 0x18b   : > { %v1360_v0 = vrot.slane %v1359_v55, 1  ;;  %v1419_v1 = vmax.f32 %v1326_v47, %v1333_v52  ;;  %v1272_v2 = vcombine.high %v1271_v57, %v1271_v57  ;;  %v1287_v3 = vrot.slane %v1224_v62, %v2290_v32 }
 0x18c   : > { %v1280_v53 = vcombine.high %v1279_v63, %v1279_v63  ;;  %v1362_v4 = vsel %vm1305_vm5, %v1263_v51, -inf  ;;  %v1369_v5 = vsel %vm1305_vm5, %v1264_v60, -inf  ;;  %v1376_v61 = vsel %vm1305_vm5, %v1271_v57, -inf }
 0x18d   : > { %v1361_v6 = vmax.f32 %v1359_v55, %v1360_v0  ;;  %v1435_v7 = vsel %vm1434_vm6, %v1419_v1, %v1418_v56  ;;  %v1288_v8 = vcombine.high %v1287_v3, %v1287_v3  ;;  %v1363_v9 = vrot.slane %v1362_v4, 4 }
 0x18e   : > { %v1437_v10 = vsel %vm1436_vm7, %v1420_v59, %v1435_v7  ;;  %v1370_v11 = vrot.slane %v1369_v5, 4  ;;  %v1377_v12 = vrot.slane %v1376_v61, 4  ;;  %v1383_v13 = vsel %vm1305_vm5, %v1272_v2, -inf }
 0x18f   : > { %v1421_v54 = vmax.f32 %v1354_v58, %v1361_v6  ;;  %v1364_v32 = vmax.f32 %v1362_v4, %v1363_v9  ;;  %v1384_v62 = vrot.slane %v1383_v13, 4  ;;  %v1390_v14 = vsel %vm1305_vm5, %v1279_v63, -inf }
 0x190   : > { %v1371_v15 = vmax.f32 %v1369_v5, %v1370_v11  ;;  %v1378_v16 = vmax.f32 %v1376_v61, %v1377_v12  ;;  %v1391_v17 = vrot.slane %v1390_v14, 4  ;;  %v1397_v18 = vsel %vm1305_vm5, %v1280_v53, -inf }
 0x191   : > { %v1439_v19 = vsel %vm1438_vm8, %v1421_v54, %v1437_v10  ;;  %v1365_v20 = vrot.slane %v1364_v32, 2  ;;  %v1385_v21 = vmax.f32 %v1383_v13, %v1384_v62  ;;  %v1398_v22 = vrot.slane %v1397_v18, 4 }
 0x192   : > { %v1372_v23 = vrot.slane %v1371_v15, 2  ;;  %v1379_v24 = vrot.slane %v1378_v16, 2  ;;  %v1392_v25 = vmax.f32 %v1390_v14, %v1391_v17  ;;  %v1404_v26 = vsel %vm1305_vm5, %v1287_v3, -inf }
 0x193   : > { %v1366_v27 = vmax.f32 %v1364_v32, %v1365_v20  ;;  %v1386_v28 = vrot.slane %v1385_v21, 2  ;;  %v1399_v29 = vmax.f32 %v1397_v18, %v1398_v22  ;;  %v1405_v30 = vrot.slane %v1404_v26, 4 }
 0x194   : > { %v1373_v31 = vmax.f32 %v1371_v15, %v1372_v23  ;;  %v1380_v33 = vmax.f32 %v1378_v16, %v1379_v24  ;;  %v1393_v34 = vrot.slane %v1392_v25, 2  ;;  %v1411_v35 = vsel %vm1305_vm5, %v1288_v8, -inf }
 0x195   : > { %v1367_v36 = vrot.slane %v1366_v27, 1  ;;  %v1387_v37 = vmax.f32 %v1385_v21, %v1386_v28  ;;  %v1400_v38 = vrot.slane %v1399_v29, 2  ;;  %v1406_v39 = vmax.f32 %v1404_v26, %v1405_v30 }
 0x196   : > { %v1374_v40 = vrot.slane %v1373_v31, 1  ;;  %v1381_v41 = vrot.slane %v1380_v33, 1  ;;  %v1394_v42 = vmax.f32 %v1392_v25, %v1393_v34  ;;  %v1412_v50 = vrot.slane %v1411_v35, 4 }
 0x197   : > { %v1388_v43 = vrot.slane %v1387_v37, 1  ;;  %v1401_v44 = vmax.f32 %v1399_v29, %v1400_v38  ;;  %v1407_v45 = vrot.slane %v1406_v39, 2  ;;  %v1368_v46 = vmax.f32 %v1366_v27, %v1367_v36 }
 0x198   : > { %v1375_v47 = vmax.f32 %v1373_v31, %v1374_v40  ;;  %v1395_v48 = vrot.slane %v1394_v42, 1  ;;  %v1413_v49 = vmax.f32 %v1411_v35, %v1412_v50  ;;  %v1382_v51 = vmax.f32 %v1380_v33, %v1381_v41 }
 0x199   : > { %v1389_v52 = vmax.f32 %v1387_v37, %v1388_v43  ;;  %v1402_v55 = vrot.slane %v1401_v44, 1  ;;  %v1408_v56 = vmax.f32 %v1406_v39, %v1407_v45 }
 0x19a   : > { %v1414_v57 = vrot.slane %v1413_v49, 2  ;;  %v1422_v58 = vmax.f32 %v1368_v46, %v1375_v47  ;;  %v1396_v59 = vmax.f32 %v1394_v42, %v1395_v48 }
 0x19b   : > { %v1403_v60 = vmax.f32 %v1401_v44, %v1402_v55  ;;  %v1423_v63 = vmax.f32 %v1382_v51, %v1389_v52  ;;  %v1409_v0 = vrot.slane %v1408_v56, 1 }
 0x19c   : > { %v1415_v1 = vmax.f32 %v1413_v49, %v1414_v57  ;;  %v1441_v2 = vsel %vm1440_vm9, %v1422_v58, %v1439_v19 }
 0x19d   : > { %v1424_v3 = vmax.f32 %v1396_v59, %v1403_v60  ;;  %v1443_v53 = vsel %vm1442_vm10, %v1423_v63, %v1441_v2  ;;  %v1410_v61 = vmax.f32 %v1408_v56, %v1409_v0 }
 0x19e   : > { %v1416_v4 = vrot.slane %v1415_v1, 1 }
 0x19f   : > { %v1445_v5 = vsel %vm1444_vm11, %v1424_v3, %v1443_v53 }
 0x1a0   : > { %v1417_v6 = vmax.f32 %v1415_v1, %v1416_v4 }
 0x1a2   : > { %v1425_v7 = vmax.f32 %v1410_v61, %v1417_v6 }
 0x1a4   : > { %v1447_v8 = vsel %vm1446_vm12, %v1425_v7, %v1445_v5 }
 0x1a5   : > { %1449 = vst [vmem:[%s168_s27] sm:$0xff] %v1447_v8 }
 0x1a6 PF: > { %s13_s12 = sadd.s32 1, %s1899_s12  }
 0x1a7   : > { %p10_p4 = scmp.ge.s32.totalorder %s13_s12, 4  }
 0x1a9   :  { %12 = sbr.rel (!%p10_p4) target bundleno = 1 (0x1), region = 66 }

</bundles_post_ra>
